<compile_context>
chip_gen: v6e
topology: v6e:2x2x1
jax: 0.10.0
libtpu: 0.0.40
codegen_flags: <defaults>
</compile_context>

<pallas_src>
import math
import functools

import jax
import jax.numpy as jnp
from jax.experimental import pallas as pl
from jax.experimental.pallas import tpu as pltpu

_VMEM_LIMIT = 32 * 1024 * 1024  # safe on v5e/v6e (128 MiB) and v7x (64 MiB)


# ----------------------------- in-kernel math helpers -----------------------------

def _erf_f32(x):
    # Abramowitz & Stegun 7.1.26 rational approximation (|err| <= 1.5e-7),
    # built only from ops guaranteed to lower in Mosaic (abs/exp/mul/add/where).
    # TODO(synk): switch to jax.lax.erf once Mosaic erf lowering is guaranteed.
    a = jnp.abs(x)
    t = 1.0 / (1.0 + 0.3275911 * a)
    poly = t * (0.254829592
                + t * (-0.284496736
                       + t * (1.421413741
                              + t * (-1.453152027 + t * 1.061405429))))
    e = 1.0 - poly * jnp.exp(-(a * a))
    return jnp.where(x >= 0.0, e, -e)


def _gelu_exact(x):
    # Matches torch.nn.GELU() (erf-based) to ~float32 precision.
    return 0.5 * x * (1.0 + _erf_f32(x * (1.0 / math.sqrt(2.0))))


def _layernorm(x, gamma, beta):
    # eps = 1e-5 (PyTorch nn.LayerNorm default); gamma/beta are (1, dims).
    mu = jnp.mean(x, axis=-1, keepdims=True)
    var = jnp.mean(jnp.square(x - mu), axis=-1, keepdims=True)
    return (x - mu) * jax.lax.rsqrt(var + 1e-5) * gamma + beta


def _gqa_attention(qkv, *, n_heads, n_groups, head_dims, scale):
    # Packed QKV (S, dims + 2*kv) is consumed in-register; each head selects its
    # query columns and its group's shared K/V columns (no repeat, no transpose).
    # NOTE: no causal mask, matching the reference forward().
    gd = n_heads // n_groups
    dims = n_heads * head_dims
    kv = n_groups * head_dims
    q = qkv[:, :dims]
    k = qkv[:, dims:dims + kv]
    v = qkv[:, dims + kv:dims + 2 * kv]

    outs = []
    for h in range(n_heads):
        g = h // gd
        qh = q[:, h * head_dims:(h + 1) * head_dims]      # (S, Dh)
        kh = k[:, g * head_dims:(g + 1) * head_dims]      # (S, Dh)
        vh = v[:, g * head_dims:(g + 1) * head_dims]      # (S, Dh)
        # q @ k^T via transposed-RHS contraction (no in-VMEM transpose of K).
        s = jax.lax.dot_general(qh, kh, (((1,), (1,)), ((), ())),
                                preferred_element_type=jnp.float32) * scale
        s = s - jnp.max(s, axis=-1, keepdims=True)
        p = jnp.exp(s)
        p = p * pl.reciprocal(jnp.sum(p, axis=-1, keepdims=True), approx=False)
        outs.append(jnp.dot(p, vh, preferred_element_type=jnp.float32))

    return jnp.concatenate(outs, axis=-1)                 # (S, dims), lane-dense


# ----------------------------- fused whole-model kernel -----------------------------

def _gpt_kernel(tok_ref, pos_ref,
                ln1_g_ref, ln1_b_ref, wqkv_w_ref, wqkv_b_ref,
                wo_w_ref, wo_b_ref, ln2_g_ref, ln2_b_ref,
                fc1_w_ref, fc1_b_ref, fc2_w_ref, fc2_b_ref,
                lnf_g_ref, lnf_b_ref, cls_w_ref, o_ref,
                *, n_layers, n_heads, n_groups, head_dims):
    scale = 1.0 / math.sqrt(head_dims)

    # Fused positional-embedding add (saves one HBM round trip of x).
    x = tok_ref[0] + pos_ref[...]                          # (S, dims)

    # Static unroll over layers: weight slices are static indexes into the
    # stacked (L, ...) VMEM refs, so everything stays in-register between ops.
    for layer in range(n_layers):
        # LN1 -> packed QKV projection (+bias).
        h = _layernorm(x, ln1_g_ref[layer], ln1_b_ref[layer])
        qkv = jnp.dot(h, wqkv_w_ref[layer],
                      preferred_element_type=jnp.float32) + wqkv_b_ref[layer]
        # GQA attention (group sharing in-kernel, no mask / dropout=identity).
        attn = _gqa_attention(qkv, n_heads=n_heads, n_groups=n_groups,
                              head_dims=head_dims, scale=scale)
        # Output projection (+bias) + residual.
        x = x + jnp.dot(attn, wo_w_ref[layer],
                        preferred_element_type=jnp.float32) + wo_b_ref[layer]
        # LN2 -> fc1 (+bias) -> exact GELU -> fc2 (+bias) -> residual.
        h2 = _layernorm(x, ln2_g_ref[layer], ln2_b_ref[layer])
        f = _gelu_exact(jnp.dot(h2, fc1_w_ref[layer],
                                preferred_element_type=jnp.float32)
                        + fc1_b_ref[layer])
        x = x + jnp.dot(f, fc2_w_ref[layer],
                        preferred_element_type=jnp.float32) + fc2_b_ref[layer]

    # Final LN -> tied-weight classifier: contract tok_emb (vocab, dims) on its
    # feature axis (trans_b) -> no transposed copy ever materialized.
    hf = _layernorm(x, lnf_g_ref[...], lnf_b_ref[...])
    o_ref[0] = jax.lax.dot_general(hf, cls_w_ref[...], (((1,), (1,)), ((), ())),
                                   preferred_element_type=jnp.float32)


# ----------------------------- model glue -----------------------------

def gpt_forward(idx, params, cfg):
    B, S = idx.shape
    dims = cfg["dims"]
    H, G, Dh, L = cfg["n_heads"], cfg["n_groups"], cfg["head_dims"], cfg["n_layers"]
    vocab = cfg["vocab_size"]
    qkv_dim = H * Dh + 2 * G * Dh

    # Embedding gather kept in plain JAX (gather has no clean BlockSpec form at
    # this scale); the positional add is fused into the kernel.
    # TODO(synk): move the gather in-kernel (SMEM idx + jnp.take on a VMEM
    # tok_emb ref) if the embedding table ever becomes DMA-significant.
    tok = jnp.take(params["tok_emb"], idx, axis=0)         # (B, S, dims)
    pos = params["pos_emb"][:S]                            # (S, dims)

    def full(shape):
        return pl.BlockSpec(shape, lambda b, _s=shape: (0,) * len(_s))

    in_specs = [
        pl.BlockSpec((1, S, dims), lambda b: (b, 0, 0)),   # tok (per-batch block)
        full((S, dims)),                                   # pos
        full((L, 1, dims)), full((L, 1, dims)),            # ln1 gamma/beta
        full((L, dims, qkv_dim)), full((L, 1, qkv_dim)),   # wqkv w/b
        full((L, dims, dims)), full((L, 1, dims)),         # wo  w/b
        full((L, 1, dims)), full((L, 1, dims)),            # ln2 gamma/beta
        full((L, dims, 4 * dims)), full((L, 1, 4 * dims)), # fc1 w/b
        full((L, 4 * dims, dims)), full((L, 1, dims)),     # fc2 w/b
        full((1, dims)), full((1, dims)),                  # final LN gamma/beta
        full((vocab, dims)),                               # tied classifier weight
    ]
    out_spec = pl.BlockSpec((1, S, vocab), lambda b: (b, 0, 0))

    kern = functools.partial(_gpt_kernel, n_layers=L, n_heads=H,
                             n_groups=G, head_dims=Dh)

    logits = pl.pallas_call(
        kern,
        out_shape=jax.ShapeDtypeStruct((B, S, vocab), jnp.float32),
        grid=(B,),
        in_specs=in_specs,
        out_specs=out_spec,
        compiler_params=pltpu.CompilerParams(
            dimension_semantics=("parallel",),
            vmem_limit_bytes=_VMEM_LIMIT),
    )(tok, pos,
      params["ln1_g"], params["ln1_b"], params["wqkv_w"], params["wqkv_b"],
      params["wo_w"], params["wo_b"], params["ln2_g"], params["ln2_b"],
      params["fc1_w"], params["fc1_b"], params["fc2_w"], params["fc2_b"],
      params["lnf_g"], params["lnf_b"], params["tok_emb"])

    loss = None  # targets=None path of the reference forward
    return logits, loss


# ----------------------------- parameters -----------------------------

def init_params(key, cfg):
    dims, vocab, maxlen = cfg["dims"], cfg["vocab_size"], cfg["max_length"]
    H, G, Dh, L = cfg["n_heads"], cfg["n_groups"], cfg["head_dims"], cfg["n_layers"]
    qkv_dim = H * Dh + 2 * G * Dh
    std = 0.02

    def nrm(k, shape):
        return std * jax.random.normal(k, shape, dtype=jnp.float32)

    k_tok, k_pos, k_qkv, k_o, k_f1, k_f2 = jax.random.split(key, 6)
    return {
        # Shared between the embedding gather and the classifier (weight tying).
        "tok_emb": nrm(k_tok, (vocab, dims)),
        "pos_emb": nrm(k_pos, (maxlen, dims)),
        "lnf_g": jnp.ones((1, dims), jnp.float32),
        "lnf_b": jnp.zeros((1, dims), jnp.float32),
        "ln1_g": jnp.ones((L, 1, dims), jnp.float32),
        "ln1_b": jnp.zeros((L, 1, dims), jnp.float32),
        "ln2_g": jnp.ones((L, 1, dims), jnp.float32),
        "ln2_b": jnp.zeros((L, 1, dims), jnp.float32),
        # Fused [w_q | w_k | w_v] per layer, stored as (L, dims, qkv_dim)
        # (same normal(0, 0.02) init as three separate nn.Linear weights).
        "wqkv_w": nrm(k_qkv, (L, dims, qkv_dim)),
        "wqkv_b": jnp.zeros((L, 1, qkv_dim), jnp.float32),
        "wo_w": nrm(k_o, (L, dims, dims)),
        "wo_b": jnp.zeros((L, 1, dims), jnp.float32),
        "fc1_w": nrm(k_f1, (L, dims, 4 * dims)),
        "fc1_b": jnp.zeros((L, 1, 4 * dims), jnp.float32),
        "fc2_w": nrm(k_f2, (L, 4 * dims, dims)),
        "fc2_b": jnp.zeros((L, 1, dims), jnp.float32),
    }


# ----------------------------- main -----------------------------

if __name__ == "__main__":
    cfg = dict(
        dims=32,
        n_heads=4,
        n_groups=2,
        head_dims=32 // 4,
        n_layers=2,
        vocab_size=64,
        max_length=16,
        dropout=0.0,
    )

    key = jax.random.PRNGKey(0)
    pkey, ikey = jax.random.split(key)
    params = init_params(pkey, cfg)

    batch, seqlen = 2, 8
    idx = jax.random.randint(ikey, (batch, seqlen), 0, cfg["vocab_size"],
                             dtype=jnp.int32)

    fwd = jax.jit(functools.partial(gpt_forward, cfg=cfg))
    logits, loss = fwd(idx, params)
    jax.block_until_ready(logits)

    assert logits.shape == (batch, seqlen, cfg["vocab_size"])
    assert logits.dtype == jnp.float32
    assert loss is None
    assert bool(jnp.all(jnp.isfinite(logits)))
    print("KERNEL_OK")
</pallas_src>

<mosaic_0001>
module attributes {stable_mosaic.version = 11 : i64} {
  func.func @_gpt_kernel(%arg0: i32, %arg1: memref<1x8x32xf32, #tpu.memory_space<vmem>>, %arg2: memref<8x32xf32, #tpu.memory_space<vmem>>, %arg3: memref<2x1x32xf32, #tpu.memory_space<vmem>>, %arg4: memref<2x1x32xf32, #tpu.memory_space<vmem>>, %arg5: memref<2x32x64xf32, #tpu.memory_space<vmem>>, %arg6: memref<2x1x64xf32, #tpu.memory_space<vmem>>, %arg7: memref<2x32x32xf32, #tpu.memory_space<vmem>>, %arg8: memref<2x1x32xf32, #tpu.memory_space<vmem>>, %arg9: memref<2x1x32xf32, #tpu.memory_space<vmem>>, %arg10: memref<2x1x32xf32, #tpu.memory_space<vmem>>, %arg11: memref<2x32x128xf32, #tpu.memory_space<vmem>>, %arg12: memref<2x1x128xf32, #tpu.memory_space<vmem>>, %arg13: memref<2x128x32xf32, #tpu.memory_space<vmem>>, %arg14: memref<2x1x32xf32, #tpu.memory_space<vmem>>, %arg15: memref<1x32xf32, #tpu.memory_space<vmem>>, %arg16: memref<1x32xf32, #tpu.memory_space<vmem>>, %arg17: memref<64x32xf32, #tpu.memory_space<vmem>>, %arg18: memref<1x8x64xf32, #tpu.memory_space<vmem>>) attributes {dimension_semantics = [#tpu.dimension_semantics<parallel>], iteration_bounds = array<i64: 2>, scalar_prefetch = 0 : i64, scratch_operands = 0 : i64, tpu.core_type = #tpu.core_type<tc>, window_params = [{transform_indices = @transform_0, window_bounds = array<i64: 1, 8, 32>}, {pipeline_mode = #tpu.pipeline_mode<synchronous>, transform_indices = @transform_1, window_bounds = array<i64: 8, 32>}, {pipeline_mode = #tpu.pipeline_mode<synchronous>, transform_indices = @transform_2, window_bounds = array<i64: 2, 1, 32>}, {pipeline_mode = #tpu.pipeline_mode<synchronous>, transform_indices = @transform_3, window_bounds = array<i64: 2, 1, 32>}, {pipeline_mode = #tpu.pipeline_mode<synchronous>, transform_indices = @transform_4, window_bounds = array<i64: 2, 32, 64>}, {pipeline_mode = #tpu.pipeline_mode<synchronous>, transform_indices = @transform_5, window_bounds = array<i64: 2, 1, 64>}, {pipeline_mode = #tpu.pipeline_mode<synchronous>, transform_indices = @transform_6, window_bounds = array<i64: 2, 32, 32>}, {pipeline_mode = #tpu.pipeline_mode<synchronous>, transform_indices = @transform_7, window_bounds = array<i64: 2, 1, 32>}, {pipeline_mode = #tpu.pipeline_mode<synchronous>, transform_indices = @transform_8, window_bounds = array<i64: 2, 1, 32>}, {pipeline_mode = #tpu.pipeline_mode<synchronous>, transform_indices = @transform_9, window_bounds = array<i64: 2, 1, 32>}, {pipeline_mode = #tpu.pipeline_mode<synchronous>, transform_indices = @transform_10, window_bounds = array<i64: 2, 32, 128>}, {pipeline_mode = #tpu.pipeline_mode<synchronous>, transform_indices = @transform_11, window_bounds = array<i64: 2, 1, 128>}, {pipeline_mode = #tpu.pipeline_mode<synchronous>, transform_indices = @transform_12, window_bounds = array<i64: 2, 128, 32>}, {pipeline_mode = #tpu.pipeline_mode<synchronous>, transform_indices = @transform_13, window_bounds = array<i64: 2, 1, 32>}, {pipeline_mode = #tpu.pipeline_mode<synchronous>, transform_indices = @transform_14, window_bounds = array<i64: 1, 32>}, {pipeline_mode = #tpu.pipeline_mode<synchronous>, transform_indices = @transform_15, window_bounds = array<i64: 1, 32>}, {pipeline_mode = #tpu.pipeline_mode<synchronous>, transform_indices = @transform_16, window_bounds = array<i64: 64, 32>}, {transform_indices = @transform_17, window_bounds = array<i64: 1, 8, 64>}]} {
    %c0 = arith.constant 0 : index
    %c0_0 = arith.constant 0 : index
    %c0_1 = arith.constant 0 : index
    %0 = vector.load %arg1[%c0, %c0_0, %c0_1] : memref<1x8x32xf32, #tpu.memory_space<vmem>>, vector<1x8x32xf32>
    %1 = vector.shape_cast %0 : vector<1x8x32xf32> to vector<8x32xf32>
    %c0_2 = arith.constant 0 : index
    %c0_3 = arith.constant 0 : index
    %2 = vector.load %arg2[%c0_2, %c0_3] : memref<8x32xf32, #tpu.memory_space<vmem>>, vector<8x32xf32>
    %3 = arith.addf %1, %2 : vector<8x32xf32>
    %c0_4 = arith.constant 0 : index
    %c0_5 = arith.constant 0 : index
    %c0_6 = arith.constant 0 : index
    %4 = vector.load %arg3[%c0_4, %c0_5, %c0_6] : memref<2x1x32xf32, #tpu.memory_space<vmem>>, vector<1x1x32xf32>
    %5 = vector.shape_cast %4 : vector<1x1x32xf32> to vector<1x32xf32>
    %c0_7 = arith.constant 0 : index
    %c0_8 = arith.constant 0 : index
    %c0_9 = arith.constant 0 : index
    %6 = vector.load %arg4[%c0_7, %c0_8, %c0_9] : memref<2x1x32xf32, #tpu.memory_space<vmem>>, vector<1x1x32xf32>
    %7 = vector.shape_cast %6 : vector<1x1x32xf32> to vector<1x32xf32>
    %cst = arith.constant dense<0.000000e+00> : vector<8xf32>
    %8 = vector.multi_reduction <add>, %3, %cst [1] : vector<8x32xf32> to vector<8xf32>
    %9 = vector.shape_cast %8 : vector<8xf32> to vector<8x1xf32>
    %cst_10 = arith.constant 3.200000e+01 : f32
    %10 = vector.broadcast %cst_10 : f32 to vector<8x1xf32>
    %11 = arith.divf %9, %10 : vector<8x1xf32>
    %12 = vector.broadcast %11 : vector<8x1xf32> to vector<8x32xf32>
    %13 = arith.subf %3, %12 : vector<8x32xf32>
    %14 = arith.mulf %13, %13 : vector<8x32xf32>
    %cst_11 = arith.constant dense<0.000000e+00> : vector<8xf32>
    %15 = vector.multi_reduction <add>, %14, %cst_11 [1] : vector<8x32xf32> to vector<8xf32>
    %16 = vector.shape_cast %15 : vector<8xf32> to vector<8x1xf32>
    %cst_12 = arith.constant 3.200000e+01 : f32
    %17 = vector.broadcast %cst_12 : f32 to vector<8x1xf32>
    %18 = arith.divf %16, %17 : vector<8x1xf32>
    %19 = vector.broadcast %11 : vector<8x1xf32> to vector<8x32xf32>
    %20 = arith.subf %3, %19 : vector<8x32xf32>
    %cst_13 = arith.constant 9.99999974E-6 : f32
    %21 = vector.broadcast %cst_13 : f32 to vector<8x1xf32>
    %22 = arith.addf %18, %21 : vector<8x1xf32>
    %23 = math.rsqrt %22 : vector<8x1xf32>
    %24 = vector.broadcast %23 : vector<8x1xf32> to vector<8x32xf32>
    %25 = arith.mulf %20, %24 : vector<8x32xf32>
    %26 = vector.broadcast %5 : vector<1x32xf32> to vector<8x32xf32>
    %27 = arith.mulf %25, %26 : vector<8x32xf32>
    %28 = vector.broadcast %7 : vector<1x32xf32> to vector<8x32xf32>
    %29 = arith.addf %27, %28 : vector<8x32xf32>
    %c0_14 = arith.constant 0 : index
    %c0_15 = arith.constant 0 : index
    %c0_16 = arith.constant 0 : index
    %30 = vector.load %arg5[%c0_14, %c0_15, %c0_16] : memref<2x32x64xf32, #tpu.memory_space<vmem>>, vector<1x32x64xf32>
    %31 = vector.shape_cast %30 : vector<1x32x64xf32> to vector<32x64xf32>
    %cst_17 = arith.constant dense<0.000000e+00> : vector<8x64xf32>
    %32 = tpu.matmul %29, %31, %cst_17 {dimension_numbers = #tpu.dot_dimension_numbers<[1], [0], [0], [1], [0, 0, 1, 1], [], []>} : vector<8x32xf32>, vector<32x64xf32>, vector<8x64xf32> -> vector<8x64xf32>
    %c0_18 = arith.constant 0 : index
    %c0_19 = arith.constant 0 : index
    %c0_20 = arith.constant 0 : index
    %33 = vector.load %arg6[%c0_18, %c0_19, %c0_20] : memref<2x1x64xf32, #tpu.memory_space<vmem>>, vector<1x1x64xf32>
    %34 = vector.shape_cast %33 : vector<1x1x64xf32> to vector<1x64xf32>
    %35 = vector.broadcast %34 : vector<1x64xf32> to vector<8x64xf32>
    %36 = arith.addf %32, %35 : vector<8x64xf32>
    %37 = vector.extract_strided_slice %36 {offsets = [0, 0], sizes = [8, 32], strides = [1, 1]} : vector<8x64xf32> to vector<8x32xf32>
    %38 = vector.extract_strided_slice %36 {offsets = [0, 32], sizes = [8, 16], strides = [1, 1]} : vector<8x64xf32> to vector<8x16xf32>
    %39 = vector.extract_strided_slice %36 {offsets = [0, 48], sizes = [8, 16], strides = [1, 1]} : vector<8x64xf32> to vector<8x16xf32>
    %40 = vector.extract_strided_slice %37 {offsets = [0, 0], sizes = [8, 8], strides = [1, 1]} : vector<8x32xf32> to vector<8x8xf32>
    %41 = vector.extract_strided_slice %38 {offsets = [0, 0], sizes = [8, 8], strides = [1, 1]} : vector<8x16xf32> to vector<8x8xf32>
    %42 = vector.extract_strided_slice %39 {offsets = [0, 0], sizes = [8, 8], strides = [1, 1]} : vector<8x16xf32> to vector<8x8xf32>
    %cst_21 = arith.constant dense<0.000000e+00> : vector<8x8xf32>
    %43 = tpu.matmul %40, %41, %cst_21 {dimension_numbers = #tpu.dot_dimension_numbers<[1], [1], [0], [0], [0, 0, 1, 0], [], []>} : vector<8x8xf32>, vector<8x8xf32>, vector<8x8xf32> -> vector<8x8xf32>
    %cst_22 = arith.constant 0.353553385 : f32
    %44 = vector.broadcast %cst_22 : f32 to vector<8x8xf32>
    %45 = arith.mulf %43, %44 : vector<8x8xf32>
    %cst_23 = arith.constant dense<0xFF800000> : vector<8xf32>
    %46 = vector.multi_reduction <maximumf>, %45, %cst_23 [1] : vector<8x8xf32> to vector<8xf32>
    %47 = vector.shape_cast %46 : vector<8xf32> to vector<8x1xf32>
    %48 = vector.broadcast %47 : vector<8x1xf32> to vector<8x8xf32>
    %49 = arith.subf %45, %48 : vector<8x8xf32>
    %50 = math.exp %49 : vector<8x8xf32>
    %cst_24 = arith.constant dense<0.000000e+00> : vector<8xf32>
    %51 = vector.multi_reduction <add>, %50, %cst_24 [1] : vector<8x8xf32> to vector<8xf32>
    %52 = vector.shape_cast %51 : vector<8xf32> to vector<8x1xf32>
    %53 = tpu.reciprocal %52 : vector<8x1xf32> -> vector<8x1xf32>
    %54 = vector.broadcast %53 : vector<8x1xf32> to vector<8x8xf32>
    %55 = arith.mulf %50, %54 : vector<8x8xf32>
    %cst_25 = arith.constant dense<0.000000e+00> : vector<8x8xf32>
    %56 = tpu.matmul %55, %42, %cst_25 {dimension_numbers = #tpu.dot_dimension_numbers<[1], [0], [0], [1], [0, 0, 1, 1], [], []>} : vector<8x8xf32>, vector<8x8xf32>, vector<8x8xf32> -> vector<8x8xf32>
    %57 = vector.extract_strided_slice %37 {offsets = [0, 8], sizes = [8, 8], strides = [1, 1]} : vector<8x32xf32> to vector<8x8xf32>
    %58 = vector.extract_strided_slice %38 {offsets = [0, 0], sizes = [8, 8], strides = [1, 1]} : vector<8x16xf32> to vector<8x8xf32>
    %59 = vector.extract_strided_slice %39 {offsets = [0, 0], sizes = [8, 8], strides = [1, 1]} : vector<8x16xf32> to vector<8x8xf32>
    %cst_26 = arith.constant dense<0.000000e+00> : vector<8x8xf32>
    %60 = tpu.matmul %57, %58, %cst_26 {dimension_numbers = #tpu.dot_dimension_numbers<[1], [1], [0], [0], [0, 0, 1, 0], [], []>} : vector<8x8xf32>, vector<8x8xf32>, vector<8x8xf32> -> vector<8x8xf32>
    %cst_27 = arith.constant 0.353553385 : f32
    %61 = vector.broadcast %cst_27 : f32 to vector<8x8xf32>
    %62 = arith.mulf %60, %61 : vector<8x8xf32>
    %cst_28 = arith.constant dense<0xFF800000> : vector<8xf32>
    %63 = vector.multi_reduction <maximumf>, %62, %cst_28 [1] : vector<8x8xf32> to vector<8xf32>
    %64 = vector.shape_cast %63 : vector<8xf32> to vector<8x1xf32>
    %65 = vector.broadcast %64 : vector<8x1xf32> to vector<8x8xf32>
    %66 = arith.subf %62, %65 : vector<8x8xf32>
    %67 = math.exp %66 : vector<8x8xf32>
    %cst_29 = arith.constant dense<0.000000e+00> : vector<8xf32>
    %68 = vector.multi_reduction <add>, %67, %cst_29 [1] : vector<8x8xf32> to vector<8xf32>
    %69 = vector.shape_cast %68 : vector<8xf32> to vector<8x1xf32>
    %70 = tpu.reciprocal %69 : vector<8x1xf32> -> vector<8x1xf32>
    %71 = vector.broadcast %70 : vector<8x1xf32> to vector<8x8xf32>
    %72 = arith.mulf %67, %71 : vector<8x8xf32>
    %cst_30 = arith.constant dense<0.000000e+00> : vector<8x8xf32>
    %73 = tpu.matmul %72, %59, %cst_30 {dimension_numbers = #tpu.dot_dimension_numbers<[1], [0], [0], [1], [0, 0, 1, 1], [], []>} : vector<8x8xf32>, vector<8x8xf32>, vector<8x8xf32> -> vector<8x8xf32>
    %74 = vector.extract_strided_slice %37 {offsets = [0, 16], sizes = [8, 8], strides = [1, 1]} : vector<8x32xf32> to vector<8x8xf32>
    %75 = vector.extract_strided_slice %38 {offsets = [0, 8], sizes = [8, 8], strides = [1, 1]} : vector<8x16xf32> to vector<8x8xf32>
    %76 = vector.extract_strided_slice %39 {offsets = [0, 8], sizes = [8, 8], strides = [1, 1]} : vector<8x16xf32> to vector<8x8xf32>
    %cst_31 = arith.constant dense<0.000000e+00> : vector<8x8xf32>
    %77 = tpu.matmul %74, %75, %cst_31 {dimension_numbers = #tpu.dot_dimension_numbers<[1], [1], [0], [0], [0, 0, 1, 0], [], []>} : vector<8x8xf32>, vector<8x8xf32>, vector<8x8xf32> -> vector<8x8xf32>
    %cst_32 = arith.constant 0.353553385 : f32
    %78 = vector.broadcast %cst_32 : f32 to vector<8x8xf32>
    %79 = arith.mulf %77, %78 : vector<8x8xf32>
    %cst_33 = arith.constant dense<0xFF800000> : vector<8xf32>
    %80 = vector.multi_reduction <maximumf>, %79, %cst_33 [1] : vector<8x8xf32> to vector<8xf32>
    %81 = vector.shape_cast %80 : vector<8xf32> to vector<8x1xf32>
    %82 = vector.broadcast %81 : vector<8x1xf32> to vector<8x8xf32>
    %83 = arith.subf %79, %82 : vector<8x8xf32>
    %84 = math.exp %83 : vector<8x8xf32>
    %cst_34 = arith.constant dense<0.000000e+00> : vector<8xf32>
    %85 = vector.multi_reduction <add>, %84, %cst_34 [1] : vector<8x8xf32> to vector<8xf32>
    %86 = vector.shape_cast %85 : vector<8xf32> to vector<8x1xf32>
    %87 = tpu.reciprocal %86 : vector<8x1xf32> -> vector<8x1xf32>
    %88 = vector.broadcast %87 : vector<8x1xf32> to vector<8x8xf32>
    %89 = arith.mulf %84, %88 : vector<8x8xf32>
    %cst_35 = arith.constant dense<0.000000e+00> : vector<8x8xf32>
    %90 = tpu.matmul %89, %76, %cst_35 {dimension_numbers = #tpu.dot_dimension_numbers<[1], [0], [0], [1], [0, 0, 1, 1], [], []>} : vector<8x8xf32>, vector<8x8xf32>, vector<8x8xf32> -> vector<8x8xf32>
    %91 = vector.extract_strided_slice %37 {offsets = [0, 24], sizes = [8, 8], strides = [1, 1]} : vector<8x32xf32> to vector<8x8xf32>
    %92 = vector.extract_strided_slice %38 {offsets = [0, 8], sizes = [8, 8], strides = [1, 1]} : vector<8x16xf32> to vector<8x8xf32>
    %93 = vector.extract_strided_slice %39 {offsets = [0, 8], sizes = [8, 8], strides = [1, 1]} : vector<8x16xf32> to vector<8x8xf32>
    %cst_36 = arith.constant dense<0.000000e+00> : vector<8x8xf32>
    %94 = tpu.matmul %91, %92, %cst_36 {dimension_numbers = #tpu.dot_dimension_numbers<[1], [1], [0], [0], [0, 0, 1, 0], [], []>} : vector<8x8xf32>, vector<8x8xf32>, vector<8x8xf32> -> vector<8x8xf32>
    %cst_37 = arith.constant 0.353553385 : f32
    %95 = vector.broadcast %cst_37 : f32 to vector<8x8xf32>
    %96 = arith.mulf %94, %95 : vector<8x8xf32>
    %cst_38 = arith.constant dense<0xFF800000> : vector<8xf32>
    %97 = vector.multi_reduction <maximumf>, %96, %cst_38 [1] : vector<8x8xf32> to vector<8xf32>
    %98 = vector.shape_cast %97 : vector<8xf32> to vector<8x1xf32>
    %99 = vector.broadcast %98 : vector<8x1xf32> to vector<8x8xf32>
    %100 = arith.subf %96, %99 : vector<8x8xf32>
    %101 = math.exp %100 : vector<8x8xf32>
    %cst_39 = arith.constant dense<0.000000e+00> : vector<8xf32>
    %102 = vector.multi_reduction <add>, %101, %cst_39 [1] : vector<8x8xf32> to vector<8xf32>
    %103 = vector.shape_cast %102 : vector<8xf32> to vector<8x1xf32>
    %104 = tpu.reciprocal %103 : vector<8x1xf32> -> vector<8x1xf32>
    %105 = vector.broadcast %104 : vector<8x1xf32> to vector<8x8xf32>
    %106 = arith.mulf %101, %105 : vector<8x8xf32>
    %cst_40 = arith.constant dense<0.000000e+00> : vector<8x8xf32>
    %107 = tpu.matmul %106, %93, %cst_40 {dimension_numbers = #tpu.dot_dimension_numbers<[1], [0], [0], [1], [0, 0, 1, 1], [], []>} : vector<8x8xf32>, vector<8x8xf32>, vector<8x8xf32> -> vector<8x8xf32>
    %108 = tpu.concatenate %56, %73, %90, %107 in 1 : vector<8x8xf32>, vector<8x8xf32>, vector<8x8xf32>, vector<8x8xf32> -> vector<8x32xf32>
    %c0_41 = arith.constant 0 : index
    %c0_42 = arith.constant 0 : index
    %c0_43 = arith.constant 0 : index
    %109 = vector.load %arg7[%c0_41, %c0_42, %c0_43] : memref<2x32x32xf32, #tpu.memory_space<vmem>>, vector<1x32x32xf32>
    %110 = vector.shape_cast %109 : vector<1x32x32xf32> to vector<32x32xf32>
    %cst_44 = arith.constant dense<0.000000e+00> : vector<8x32xf32>
    %111 = tpu.matmul %108, %110, %cst_44 {dimension_numbers = #tpu.dot_dimension_numbers<[1], [0], [0], [1], [0, 0, 1, 1], [], []>} : vector<8x32xf32>, vector<32x32xf32>, vector<8x32xf32> -> vector<8x32xf32>
    %112 = arith.addf %3, %111 : vector<8x32xf32>
    %c0_45 = arith.constant 0 : index
    %c0_46 = arith.constant 0 : index
    %c0_47 = arith.constant 0 : index
    %113 = vector.load %arg8[%c0_45, %c0_46, %c0_47] : memref<2x1x32xf32, #tpu.memory_space<vmem>>, vector<1x1x32xf32>
    %114 = vector.shape_cast %113 : vector<1x1x32xf32> to vector<1x32xf32>
    %115 = vector.broadcast %114 : vector<1x32xf32> to vector<8x32xf32>
    %116 = arith.addf %112, %115 : vector<8x32xf32>
    %c0_48 = arith.constant 0 : index
    %c0_49 = arith.constant 0 : index
    %c0_50 = arith.constant 0 : index
    %117 = vector.load %arg9[%c0_48, %c0_49, %c0_50] : memref<2x1x32xf32, #tpu.memory_space<vmem>>, vector<1x1x32xf32>
    %118 = vector.shape_cast %117 : vector<1x1x32xf32> to vector<1x32xf32>
    %c0_51 = arith.constant 0 : index
    %c0_52 = arith.constant 0 : index
    %c0_53 = arith.constant 0 : index
    %119 = vector.load %arg10[%c0_51, %c0_52, %c0_53] : memref<2x1x32xf32, #tpu.memory_space<vmem>>, vector<1x1x32xf32>
    %120 = vector.shape_cast %119 : vector<1x1x32xf32> to vector<1x32xf32>
    %cst_54 = arith.constant dense<0.000000e+00> : vector<8xf32>
    %121 = vector.multi_reduction <add>, %116, %cst_54 [1] : vector<8x32xf32> to vector<8xf32>
    %122 = vector.shape_cast %121 : vector<8xf32> to vector<8x1xf32>
    %cst_55 = arith.constant 3.200000e+01 : f32
    %123 = vector.broadcast %cst_55 : f32 to vector<8x1xf32>
    %124 = arith.divf %122, %123 : vector<8x1xf32>
    %125 = vector.broadcast %124 : vector<8x1xf32> to vector<8x32xf32>
    %126 = arith.subf %116, %125 : vector<8x32xf32>
    %127 = arith.mulf %126, %126 : vector<8x32xf32>
    %cst_56 = arith.constant dense<0.000000e+00> : vector<8xf32>
    %128 = vector.multi_reduction <add>, %127, %cst_56 [1] : vector<8x32xf32> to vector<8xf32>
    %129 = vector.shape_cast %128 : vector<8xf32> to vector<8x1xf32>
    %cst_57 = arith.constant 3.200000e+01 : f32
    %130 = vector.broadcast %cst_57 : f32 to vector<8x1xf32>
    %131 = arith.divf %129, %130 : vector<8x1xf32>
    %132 = vector.broadcast %124 : vector<8x1xf32> to vector<8x32xf32>
    %133 = arith.subf %116, %132 : vector<8x32xf32>
    %cst_58 = arith.constant 9.99999974E-6 : f32
    %134 = vector.broadcast %cst_58 : f32 to vector<8x1xf32>
    %135 = arith.addf %131, %134 : vector<8x1xf32>
    %136 = math.rsqrt %135 : vector<8x1xf32>
    %137 = vector.broadcast %136 : vector<8x1xf32> to vector<8x32xf32>
    %138 = arith.mulf %133, %137 : vector<8x32xf32>
    %139 = vector.broadcast %118 : vector<1x32xf32> to vector<8x32xf32>
    %140 = arith.mulf %138, %139 : vector<8x32xf32>
    %141 = vector.broadcast %120 : vector<1x32xf32> to vector<8x32xf32>
    %142 = arith.addf %140, %141 : vector<8x32xf32>
    %c0_59 = arith.constant 0 : index
    %c0_60 = arith.constant 0 : index
    %c0_61 = arith.constant 0 : index
    %143 = vector.load %arg11[%c0_59, %c0_60, %c0_61] : memref<2x32x128xf32, #tpu.memory_space<vmem>>, vector<1x32x128xf32>
    %144 = vector.shape_cast %143 : vector<1x32x128xf32> to vector<32x128xf32>
    %cst_62 = arith.constant dense<0.000000e+00> : vector<8x128xf32>
    %145 = tpu.matmul %142, %144, %cst_62 {dimension_numbers = #tpu.dot_dimension_numbers<[1], [0], [0], [1], [0, 0, 1, 1], [], []>} : vector<8x32xf32>, vector<32x128xf32>, vector<8x128xf32> -> vector<8x128xf32>
    %c0_63 = arith.constant 0 : index
    %c0_64 = arith.constant 0 : index
    %c0_65 = arith.constant 0 : index
    %146 = vector.load %arg12[%c0_63, %c0_64, %c0_65] : memref<2x1x128xf32, #tpu.memory_space<vmem>>, vector<1x1x128xf32>
    %147 = vector.shape_cast %146 : vector<1x1x128xf32> to vector<1x128xf32>
    %148 = vector.broadcast %147 : vector<1x128xf32> to vector<8x128xf32>
    %149 = arith.addf %145, %148 : vector<8x128xf32>
    %cst_66 = arith.constant 5.000000e-01 : f32
    %150 = vector.broadcast %cst_66 : f32 to vector<8x128xf32>
    %151 = arith.mulf %150, %149 : vector<8x128xf32>
    %cst_67 = arith.constant 0.707106769 : f32
    %152 = vector.broadcast %cst_67 : f32 to vector<8x128xf32>
    %153 = arith.mulf %149, %152 : vector<8x128xf32>
    %154 = math.absf %153 : vector<8x128xf32>
    %cst_68 = arith.constant 0.327591091 : f32
    %155 = vector.broadcast %cst_68 : f32 to vector<8x128xf32>
    %156 = arith.mulf %155, %154 : vector<8x128xf32>
    %cst_69 = arith.constant 1.000000e+00 : f32
    %157 = vector.broadcast %cst_69 : f32 to vector<8x128xf32>
    %158 = arith.addf %157, %156 : vector<8x128xf32>
    %cst_70 = arith.constant 1.000000e+00 : f32
    %159 = vector.broadcast %cst_70 : f32 to vector<8x128xf32>
    %160 = arith.divf %159, %158 : vector<8x128xf32>
    %cst_71 = arith.constant 1.06140542 : f32
    %161 = vector.broadcast %cst_71 : f32 to vector<8x128xf32>
    %162 = arith.mulf %160, %161 : vector<8x128xf32>
    %cst_72 = arith.constant -1.45315206 : f32
    %163 = vector.broadcast %cst_72 : f32 to vector<8x128xf32>
    %164 = arith.addf %163, %162 : vector<8x128xf32>
    %165 = arith.mulf %160, %164 : vector<8x128xf32>
    %cst_73 = arith.constant 1.42141378 : f32
    %166 = vector.broadcast %cst_73 : f32 to vector<8x128xf32>
    %167 = arith.addf %166, %165 : vector<8x128xf32>
    %168 = arith.mulf %160, %167 : vector<8x128xf32>
    %cst_74 = arith.constant -0.284496725 : f32
    %169 = vector.broadcast %cst_74 : f32 to vector<8x128xf32>
    %170 = arith.addf %169, %168 : vector<8x128xf32>
    %171 = arith.mulf %160, %170 : vector<8x128xf32>
    %cst_75 = arith.constant 0.254829586 : f32
    %172 = vector.broadcast %cst_75 : f32 to vector<8x128xf32>
    %173 = arith.addf %172, %171 : vector<8x128xf32>
    %174 = arith.mulf %160, %173 : vector<8x128xf32>
    %175 = arith.mulf %154, %154 : vector<8x128xf32>
    %cst_76 = arith.constant 0.000000e+00 : f32
    %176 = vector.broadcast %cst_76 : f32 to vector<8x128xf32>
    %177 = arith.subf %176, %175 : vector<8x128xf32>
    %178 = math.exp %177 : vector<8x128xf32>
    %179 = arith.mulf %174, %178 : vector<8x128xf32>
    %cst_77 = arith.constant 1.000000e+00 : f32
    %180 = vector.broadcast %cst_77 : f32 to vector<8x128xf32>
    %181 = arith.subf %180, %179 : vector<8x128xf32>
    %cst_78 = arith.constant 0.000000e+00 : f32
    %182 = vector.broadcast %cst_78 : f32 to vector<8x128xf32>
    %183 = arith.cmpf oge, %153, %182 : vector<8x128xf32>
    %cst_79 = arith.constant 0.000000e+00 : f32
    %184 = vector.broadcast %cst_79 : f32 to vector<8x128xf32>
    %185 = arith.subf %184, %181 : vector<8x128xf32>
    %186 = arith.select %183, %181, %185 : vector<8x128xi1>, vector<8x128xf32>
    %cst_80 = arith.constant 1.000000e+00 : f32
    %187 = vector.broadcast %cst_80 : f32 to vector<8x128xf32>
    %188 = arith.addf %187, %186 : vector<8x128xf32>
    %189 = arith.mulf %151, %188 : vector<8x128xf32>
    %c0_81 = arith.constant 0 : index
    %c0_82 = arith.constant 0 : index
    %c0_83 = arith.constant 0 : index
    %190 = vector.load %arg13[%c0_81, %c0_82, %c0_83] : memref<2x128x32xf32, #tpu.memory_space<vmem>>, vector<1x128x32xf32>
    %191 = vector.shape_cast %190 : vector<1x128x32xf32> to vector<128x32xf32>
    %cst_84 = arith.constant dense<0.000000e+00> : vector<8x32xf32>
    %192 = tpu.matmul %189, %191, %cst_84 {dimension_numbers = #tpu.dot_dimension_numbers<[1], [0], [0], [1], [0, 0, 1, 1], [], []>} : vector<8x128xf32>, vector<128x32xf32>, vector<8x32xf32> -> vector<8x32xf32>
    %193 = arith.addf %116, %192 : vector<8x32xf32>
    %c0_85 = arith.constant 0 : index
    %c0_86 = arith.constant 0 : index
    %c0_87 = arith.constant 0 : index
    %194 = vector.load %arg14[%c0_85, %c0_86, %c0_87] : memref<2x1x32xf32, #tpu.memory_space<vmem>>, vector<1x1x32xf32>
    %195 = vector.shape_cast %194 : vector<1x1x32xf32> to vector<1x32xf32>
    %196 = vector.broadcast %195 : vector<1x32xf32> to vector<8x32xf32>
    %197 = arith.addf %193, %196 : vector<8x32xf32>
    %c1 = arith.constant 1 : index
    %c0_88 = arith.constant 0 : index
    %c0_89 = arith.constant 0 : index
    %198 = vector.load %arg3[%c1, %c0_88, %c0_89] : memref<2x1x32xf32, #tpu.memory_space<vmem>>, vector<1x1x32xf32>
    %199 = vector.shape_cast %198 : vector<1x1x32xf32> to vector<1x32xf32>
    %c1_90 = arith.constant 1 : index
    %c0_91 = arith.constant 0 : index
    %c0_92 = arith.constant 0 : index
    %200 = vector.load %arg4[%c1_90, %c0_91, %c0_92] : memref<2x1x32xf32, #tpu.memory_space<vmem>>, vector<1x1x32xf32>
    %201 = vector.shape_cast %200 : vector<1x1x32xf32> to vector<1x32xf32>
    %cst_93 = arith.constant dense<0.000000e+00> : vector<8xf32>
    %202 = vector.multi_reduction <add>, %197, %cst_93 [1] : vector<8x32xf32> to vector<8xf32>
    %203 = vector.shape_cast %202 : vector<8xf32> to vector<8x1xf32>
    %cst_94 = arith.constant 3.200000e+01 : f32
    %204 = vector.broadcast %cst_94 : f32 to vector<8x1xf32>
    %205 = arith.divf %203, %204 : vector<8x1xf32>
    %206 = vector.broadcast %205 : vector<8x1xf32> to vector<8x32xf32>
    %207 = arith.subf %197, %206 : vector<8x32xf32>
    %208 = arith.mulf %207, %207 : vector<8x32xf32>
    %cst_95 = arith.constant dense<0.000000e+00> : vector<8xf32>
    %209 = vector.multi_reduction <add>, %208, %cst_95 [1] : vector<8x32xf32> to vector<8xf32>
    %210 = vector.shape_cast %209 : vector<8xf32> to vector<8x1xf32>
    %cst_96 = arith.constant 3.200000e+01 : f32
    %211 = vector.broadcast %cst_96 : f32 to vector<8x1xf32>
    %212 = arith.divf %210, %211 : vector<8x1xf32>
    %213 = vector.broadcast %205 : vector<8x1xf32> to vector<8x32xf32>
    %214 = arith.subf %197, %213 : vector<8x32xf32>
    %cst_97 = arith.constant 9.99999974E-6 : f32
    %215 = vector.broadcast %cst_97 : f32 to vector<8x1xf32>
    %216 = arith.addf %212, %215 : vector<8x1xf32>
    %217 = math.rsqrt %216 : vector<8x1xf32>
    %218 = vector.broadcast %217 : vector<8x1xf32> to vector<8x32xf32>
    %219 = arith.mulf %214, %218 : vector<8x32xf32>
    %220 = vector.broadcast %199 : vector<1x32xf32> to vector<8x32xf32>
    %221 = arith.mulf %219, %220 : vector<8x32xf32>
    %222 = vector.broadcast %201 : vector<1x32xf32> to vector<8x32xf32>
    %223 = arith.addf %221, %222 : vector<8x32xf32>
    %c1_98 = arith.constant 1 : index
    %c0_99 = arith.constant 0 : index
    %c0_100 = arith.constant 0 : index
    %224 = vector.load %arg5[%c1_98, %c0_99, %c0_100] : memref<2x32x64xf32, #tpu.memory_space<vmem>>, vector<1x32x64xf32>
    %225 = vector.shape_cast %224 : vector<1x32x64xf32> to vector<32x64xf32>
    %cst_101 = arith.constant dense<0.000000e+00> : vector<8x64xf32>
    %226 = tpu.matmul %223, %225, %cst_101 {dimension_numbers = #tpu.dot_dimension_numbers<[1], [0], [0], [1], [0, 0, 1, 1], [], []>} : vector<8x32xf32>, vector<32x64xf32>, vector<8x64xf32> -> vector<8x64xf32>
    %c1_102 = arith.constant 1 : index
    %c0_103 = arith.constant 0 : index
    %c0_104 = arith.constant 0 : index
    %227 = vector.load %arg6[%c1_102, %c0_103, %c0_104] : memref<2x1x64xf32, #tpu.memory_space<vmem>>, vector<1x1x64xf32>
    %228 = vector.shape_cast %227 : vector<1x1x64xf32> to vector<1x64xf32>
    %229 = vector.broadcast %228 : vector<1x64xf32> to vector<8x64xf32>
    %230 = arith.addf %226, %229 : vector<8x64xf32>
    %231 = vector.extract_strided_slice %230 {offsets = [0, 0], sizes = [8, 32], strides = [1, 1]} : vector<8x64xf32> to vector<8x32xf32>
    %232 = vector.extract_strided_slice %230 {offsets = [0, 32], sizes = [8, 16], strides = [1, 1]} : vector<8x64xf32> to vector<8x16xf32>
    %233 = vector.extract_strided_slice %230 {offsets = [0, 48], sizes = [8, 16], strides = [1, 1]} : vector<8x64xf32> to vector<8x16xf32>
    %234 = vector.extract_strided_slice %231 {offsets = [0, 0], sizes = [8, 8], strides = [1, 1]} : vector<8x32xf32> to vector<8x8xf32>
    %235 = vector.extract_strided_slice %232 {offsets = [0, 0], sizes = [8, 8], strides = [1, 1]} : vector<8x16xf32> to vector<8x8xf32>
    %236 = vector.extract_strided_slice %233 {offsets = [0, 0], sizes = [8, 8], strides = [1, 1]} : vector<8x16xf32> to vector<8x8xf32>
    %cst_105 = arith.constant dense<0.000000e+00> : vector<8x8xf32>
    %237 = tpu.matmul %234, %235, %cst_105 {dimension_numbers = #tpu.dot_dimension_numbers<[1], [1], [0], [0], [0, 0, 1, 0], [], []>} : vector<8x8xf32>, vector<8x8xf32>, vector<8x8xf32> -> vector<8x8xf32>
    %cst_106 = arith.constant 0.353553385 : f32
    %238 = vector.broadcast %cst_106 : f32 to vector<8x8xf32>
    %239 = arith.mulf %237, %238 : vector<8x8xf32>
    %cst_107 = arith.constant dense<0xFF800000> : vector<8xf32>
    %240 = vector.multi_reduction <maximumf>, %239, %cst_107 [1] : vector<8x8xf32> to vector<8xf32>
    %241 = vector.shape_cast %240 : vector<8xf32> to vector<8x1xf32>
    %242 = vector.broadcast %241 : vector<8x1xf32> to vector<8x8xf32>
    %243 = arith.subf %239, %242 : vector<8x8xf32>
    %244 = math.exp %243 : vector<8x8xf32>
    %cst_108 = arith.constant dense<0.000000e+00> : vector<8xf32>
    %245 = vector.multi_reduction <add>, %244, %cst_108 [1] : vector<8x8xf32> to vector<8xf32>
    %246 = vector.shape_cast %245 : vector<8xf32> to vector<8x1xf32>
    %247 = tpu.reciprocal %246 : vector<8x1xf32> -> vector<8x1xf32>
    %248 = vector.broadcast %247 : vector<8x1xf32> to vector<8x8xf32>
    %249 = arith.mulf %244, %248 : vector<8x8xf32>
    %cst_109 = arith.constant dense<0.000000e+00> : vector<8x8xf32>
    %250 = tpu.matmul %249, %236, %cst_109 {dimension_numbers = #tpu.dot_dimension_numbers<[1], [0], [0], [1], [0, 0, 1, 1], [], []>} : vector<8x8xf32>, vector<8x8xf32>, vector<8x8xf32> -> vector<8x8xf32>
    %251 = vector.extract_strided_slice %231 {offsets = [0, 8], sizes = [8, 8], strides = [1, 1]} : vector<8x32xf32> to vector<8x8xf32>
    %252 = vector.extract_strided_slice %232 {offsets = [0, 0], sizes = [8, 8], strides = [1, 1]} : vector<8x16xf32> to vector<8x8xf32>
    %253 = vector.extract_strided_slice %233 {offsets = [0, 0], sizes = [8, 8], strides = [1, 1]} : vector<8x16xf32> to vector<8x8xf32>
    %cst_110 = arith.constant dense<0.000000e+00> : vector<8x8xf32>
    %254 = tpu.matmul %251, %252, %cst_110 {dimension_numbers = #tpu.dot_dimension_numbers<[1], [1], [0], [0], [0, 0, 1, 0], [], []>} : vector<8x8xf32>, vector<8x8xf32>, vector<8x8xf32> -> vector<8x8xf32>
    %cst_111 = arith.constant 0.353553385 : f32
    %255 = vector.broadcast %cst_111 : f32 to vector<8x8xf32>
    %256 = arith.mulf %254, %255 : vector<8x8xf32>
    %cst_112 = arith.constant dense<0xFF800000> : vector<8xf32>
    %257 = vector.multi_reduction <maximumf>, %256, %cst_112 [1] : vector<8x8xf32> to vector<8xf32>
    %258 = vector.shape_cast %257 : vector<8xf32> to vector<8x1xf32>
    %259 = vector.broadcast %258 : vector<8x1xf32> to vector<8x8xf32>
    %260 = arith.subf %256, %259 : vector<8x8xf32>
    %261 = math.exp %260 : vector<8x8xf32>
    %cst_113 = arith.constant dense<0.000000e+00> : vector<8xf32>
    %262 = vector.multi_reduction <add>, %261, %cst_113 [1] : vector<8x8xf32> to vector<8xf32>
    %263 = vector.shape_cast %262 : vector<8xf32> to vector<8x1xf32>
    %264 = tpu.reciprocal %263 : vector<8x1xf32> -> vector<8x1xf32>
    %265 = vector.broadcast %264 : vector<8x1xf32> to vector<8x8xf32>
    %266 = arith.mulf %261, %265 : vector<8x8xf32>
    %cst_114 = arith.constant dense<0.000000e+00> : vector<8x8xf32>
    %267 = tpu.matmul %266, %253, %cst_114 {dimension_numbers = #tpu.dot_dimension_numbers<[1], [0], [0], [1], [0, 0, 1, 1], [], []>} : vector<8x8xf32>, vector<8x8xf32>, vector<8x8xf32> -> vector<8x8xf32>
    %268 = vector.extract_strided_slice %231 {offsets = [0, 16], sizes = [8, 8], strides = [1, 1]} : vector<8x32xf32> to vector<8x8xf32>
    %269 = vector.extract_strided_slice %232 {offsets = [0, 8], sizes = [8, 8], strides = [1, 1]} : vector<8x16xf32> to vector<8x8xf32>
    %270 = vector.extract_strided_slice %233 {offsets = [0, 8], sizes = [8, 8], strides = [1, 1]} : vector<8x16xf32> to vector<8x8xf32>
    %cst_115 = arith.constant dense<0.000000e+00> : vector<8x8xf32>
    %271 = tpu.matmul %268, %269, %cst_115 {dimension_numbers = #tpu.dot_dimension_numbers<[1], [1], [0], [0], [0, 0, 1, 0], [], []>} : vector<8x8xf32>, vector<8x8xf32>, vector<8x8xf32> -> vector<8x8xf32>
    %cst_116 = arith.constant 0.353553385 : f32
    %272 = vector.broadcast %cst_116 : f32 to vector<8x8xf32>
    %273 = arith.mulf %271, %272 : vector<8x8xf32>
    %cst_117 = arith.constant dense<0xFF800000> : vector<8xf32>
    %274 = vector.multi_reduction <maximumf>, %273, %cst_117 [1] : vector<8x8xf32> to vector<8xf32>
    %275 = vector.shape_cast %274 : vector<8xf32> to vector<8x1xf32>
    %276 = vector.broadcast %275 : vector<8x1xf32> to vector<8x8xf32>
    %277 = arith.subf %273, %276 : vector<8x8xf32>
    %278 = math.exp %277 : vector<8x8xf32>
    %cst_118 = arith.constant dense<0.000000e+00> : vector<8xf32>
    %279 = vector.multi_reduction <add>, %278, %cst_118 [1] : vector<8x8xf32> to vector<8xf32>
    %280 = vector.shape_cast %279 : vector<8xf32> to vector<8x1xf32>
    %281 = tpu.reciprocal %280 : vector<8x1xf32> -> vector<8x1xf32>
    %282 = vector.broadcast %281 : vector<8x1xf32> to vector<8x8xf32>
    %283 = arith.mulf %278, %282 : vector<8x8xf32>
    %cst_119 = arith.constant dense<0.000000e+00> : vector<8x8xf32>
    %284 = tpu.matmul %283, %270, %cst_119 {dimension_numbers = #tpu.dot_dimension_numbers<[1], [0], [0], [1], [0, 0, 1, 1], [], []>} : vector<8x8xf32>, vector<8x8xf32>, vector<8x8xf32> -> vector<8x8xf32>
    %285 = vector.extract_strided_slice %231 {offsets = [0, 24], sizes = [8, 8], strides = [1, 1]} : vector<8x32xf32> to vector<8x8xf32>
    %286 = vector.extract_strided_slice %232 {offsets = [0, 8], sizes = [8, 8], strides = [1, 1]} : vector<8x16xf32> to vector<8x8xf32>
    %287 = vector.extract_strided_slice %233 {offsets = [0, 8], sizes = [8, 8], strides = [1, 1]} : vector<8x16xf32> to vector<8x8xf32>
    %cst_120 = arith.constant dense<0.000000e+00> : vector<8x8xf32>
    %288 = tpu.matmul %285, %286, %cst_120 {dimension_numbers = #tpu.dot_dimension_numbers<[1], [1], [0], [0], [0, 0, 1, 0], [], []>} : vector<8x8xf32>, vector<8x8xf32>, vector<8x8xf32> -> vector<8x8xf32>
    %cst_121 = arith.constant 0.353553385 : f32
    %289 = vector.broadcast %cst_121 : f32 to vector<8x8xf32>
    %290 = arith.mulf %288, %289 : vector<8x8xf32>
    %cst_122 = arith.constant dense<0xFF800000> : vector<8xf32>
    %291 = vector.multi_reduction <maximumf>, %290, %cst_122 [1] : vector<8x8xf32> to vector<8xf32>
    %292 = vector.shape_cast %291 : vector<8xf32> to vector<8x1xf32>
    %293 = vector.broadcast %292 : vector<8x1xf32> to vector<8x8xf32>
    %294 = arith.subf %290, %293 : vector<8x8xf32>
    %295 = math.exp %294 : vector<8x8xf32>
    %cst_123 = arith.constant dense<0.000000e+00> : vector<8xf32>
    %296 = vector.multi_reduction <add>, %295, %cst_123 [1] : vector<8x8xf32> to vector<8xf32>
    %297 = vector.shape_cast %296 : vector<8xf32> to vector<8x1xf32>
    %298 = tpu.reciprocal %297 : vector<8x1xf32> -> vector<8x1xf32>
    %299 = vector.broadcast %298 : vector<8x1xf32> to vector<8x8xf32>
    %300 = arith.mulf %295, %299 : vector<8x8xf32>
    %cst_124 = arith.constant dense<0.000000e+00> : vector<8x8xf32>
    %301 = tpu.matmul %300, %287, %cst_124 {dimension_numbers = #tpu.dot_dimension_numbers<[1], [0], [0], [1], [0, 0, 1, 1], [], []>} : vector<8x8xf32>, vector<8x8xf32>, vector<8x8xf32> -> vector<8x8xf32>
    %302 = tpu.concatenate %250, %267, %284, %301 in 1 : vector<8x8xf32>, vector<8x8xf32>, vector<8x8xf32>, vector<8x8xf32> -> vector<8x32xf32>
    %c1_125 = arith.constant 1 : index
    %c0_126 = arith.constant 0 : index
    %c0_127 = arith.constant 0 : index
    %303 = vector.load %arg7[%c1_125, %c0_126, %c0_127] : memref<2x32x32xf32, #tpu.memory_space<vmem>>, vector<1x32x32xf32>
    %304 = vector.shape_cast %303 : vector<1x32x32xf32> to vector<32x32xf32>
    %cst_128 = arith.constant dense<0.000000e+00> : vector<8x32xf32>
    %305 = tpu.matmul %302, %304, %cst_128 {dimension_numbers = #tpu.dot_dimension_numbers<[1], [0], [0], [1], [0, 0, 1, 1], [], []>} : vector<8x32xf32>, vector<32x32xf32>, vector<8x32xf32> -> vector<8x32xf32>
    %306 = arith.addf %197, %305 : vector<8x32xf32>
    %c1_129 = arith.constant 1 : index
    %c0_130 = arith.constant 0 : index
    %c0_131 = arith.constant 0 : index
    %307 = vector.load %arg8[%c1_129, %c0_130, %c0_131] : memref<2x1x32xf32, #tpu.memory_space<vmem>>, vector<1x1x32xf32>
    %308 = vector.shape_cast %307 : vector<1x1x32xf32> to vector<1x32xf32>
    %309 = vector.broadcast %308 : vector<1x32xf32> to vector<8x32xf32>
    %310 = arith.addf %306, %309 : vector<8x32xf32>
    %c1_132 = arith.constant 1 : index
    %c0_133 = arith.constant 0 : index
    %c0_134 = arith.constant 0 : index
    %311 = vector.load %arg9[%c1_132, %c0_133, %c0_134] : memref<2x1x32xf32, #tpu.memory_space<vmem>>, vector<1x1x32xf32>
    %312 = vector.shape_cast %311 : vector<1x1x32xf32> to vector<1x32xf32>
    %c1_135 = arith.constant 1 : index
    %c0_136 = arith.constant 0 : index
    %c0_137 = arith.constant 0 : index
    %313 = vector.load %arg10[%c1_135, %c0_136, %c0_137] : memref<2x1x32xf32, #tpu.memory_space<vmem>>, vector<1x1x32xf32>
    %314 = vector.shape_cast %313 : vector<1x1x32xf32> to vector<1x32xf32>
    %cst_138 = arith.constant dense<0.000000e+00> : vector<8xf32>
    %315 = vector.multi_reduction <add>, %310, %cst_138 [1] : vector<8x32xf32> to vector<8xf32>
    %316 = vector.shape_cast %315 : vector<8xf32> to vector<8x1xf32>
    %cst_139 = arith.constant 3.200000e+01 : f32
    %317 = vector.broadcast %cst_139 : f32 to vector<8x1xf32>
    %318 = arith.divf %316, %317 : vector<8x1xf32>
    %319 = vector.broadcast %318 : vector<8x1xf32> to vector<8x32xf32>
    %320 = arith.subf %310, %319 : vector<8x32xf32>
    %321 = arith.mulf %320, %320 : vector<8x32xf32>
    %cst_140 = arith.constant dense<0.000000e+00> : vector<8xf32>
    %322 = vector.multi_reduction <add>, %321, %cst_140 [1] : vector<8x32xf32> to vector<8xf32>
    %323 = vector.shape_cast %322 : vector<8xf32> to vector<8x1xf32>
    %cst_141 = arith.constant 3.200000e+01 : f32
    %324 = vector.broadcast %cst_141 : f32 to vector<8x1xf32>
    %325 = arith.divf %323, %324 : vector<8x1xf32>
    %326 = vector.broadcast %318 : vector<8x1xf32> to vector<8x32xf32>
    %327 = arith.subf %310, %326 : vector<8x32xf32>
    %cst_142 = arith.constant 9.99999974E-6 : f32
    %328 = vector.broadcast %cst_142 : f32 to vector<8x1xf32>
    %329 = arith.addf %325, %328 : vector<8x1xf32>
    %330 = math.rsqrt %329 : vector<8x1xf32>
    %331 = vector.broadcast %330 : vector<8x1xf32> to vector<8x32xf32>
    %332 = arith.mulf %327, %331 : vector<8x32xf32>
    %333 = vector.broadcast %312 : vector<1x32xf32> to vector<8x32xf32>
    %334 = arith.mulf %332, %333 : vector<8x32xf32>
    %335 = vector.broadcast %314 : vector<1x32xf32> to vector<8x32xf32>
    %336 = arith.addf %334, %335 : vector<8x32xf32>
    %c1_143 = arith.constant 1 : index
    %c0_144 = arith.constant 0 : index
    %c0_145 = arith.constant 0 : index
    %337 = vector.load %arg11[%c1_143, %c0_144, %c0_145] : memref<2x32x128xf32, #tpu.memory_space<vmem>>, vector<1x32x128xf32>
    %338 = vector.shape_cast %337 : vector<1x32x128xf32> to vector<32x128xf32>
    %cst_146 = arith.constant dense<0.000000e+00> : vector<8x128xf32>
    %339 = tpu.matmul %336, %338, %cst_146 {dimension_numbers = #tpu.dot_dimension_numbers<[1], [0], [0], [1], [0, 0, 1, 1], [], []>} : vector<8x32xf32>, vector<32x128xf32>, vector<8x128xf32> -> vector<8x128xf32>
    %c1_147 = arith.constant 1 : index
    %c0_148 = arith.constant 0 : index
    %c0_149 = arith.constant 0 : index
    %340 = vector.load %arg12[%c1_147, %c0_148, %c0_149] : memref<2x1x128xf32, #tpu.memory_space<vmem>>, vector<1x1x128xf32>
    %341 = vector.shape_cast %340 : vector<1x1x128xf32> to vector<1x128xf32>
    %342 = vector.broadcast %341 : vector<1x128xf32> to vector<8x128xf32>
    %343 = arith.addf %339, %342 : vector<8x128xf32>
    %cst_150 = arith.constant 5.000000e-01 : f32
    %344 = vector.broadcast %cst_150 : f32 to vector<8x128xf32>
    %345 = arith.mulf %344, %343 : vector<8x128xf32>
    %cst_151 = arith.constant 0.707106769 : f32
    %346 = vector.broadcast %cst_151 : f32 to vector<8x128xf32>
    %347 = arith.mulf %343, %346 : vector<8x128xf32>
    %348 = math.absf %347 : vector<8x128xf32>
    %cst_152 = arith.constant 0.327591091 : f32
    %349 = vector.broadcast %cst_152 : f32 to vector<8x128xf32>
    %350 = arith.mulf %349, %348 : vector<8x128xf32>
    %cst_153 = arith.constant 1.000000e+00 : f32
    %351 = vector.broadcast %cst_153 : f32 to vector<8x128xf32>
    %352 = arith.addf %351, %350 : vector<8x128xf32>
    %cst_154 = arith.constant 1.000000e+00 : f32
    %353 = vector.broadcast %cst_154 : f32 to vector<8x128xf32>
    %354 = arith.divf %353, %352 : vector<8x128xf32>
    %cst_155 = arith.constant 1.06140542 : f32
    %355 = vector.broadcast %cst_155 : f32 to vector<8x128xf32>
    %356 = arith.mulf %354, %355 : vector<8x128xf32>
    %cst_156 = arith.constant -1.45315206 : f32
    %357 = vector.broadcast %cst_156 : f32 to vector<8x128xf32>
    %358 = arith.addf %357, %356 : vector<8x128xf32>
    %359 = arith.mulf %354, %358 : vector<8x128xf32>
    %cst_157 = arith.constant 1.42141378 : f32
    %360 = vector.broadcast %cst_157 : f32 to vector<8x128xf32>
    %361 = arith.addf %360, %359 : vector<8x128xf32>
    %362 = arith.mulf %354, %361 : vector<8x128xf32>
    %cst_158 = arith.constant -0.284496725 : f32
    %363 = vector.broadcast %cst_158 : f32 to vector<8x128xf32>
    %364 = arith.addf %363, %362 : vector<8x128xf32>
    %365 = arith.mulf %354, %364 : vector<8x128xf32>
    %cst_159 = arith.constant 0.254829586 : f32
    %366 = vector.broadcast %cst_159 : f32 to vector<8x128xf32>
    %367 = arith.addf %366, %365 : vector<8x128xf32>
    %368 = arith.mulf %354, %367 : vector<8x128xf32>
    %369 = arith.mulf %348, %348 : vector<8x128xf32>
    %cst_160 = arith.constant 0.000000e+00 : f32
    %370 = vector.broadcast %cst_160 : f32 to vector<8x128xf32>
    %371 = arith.subf %370, %369 : vector<8x128xf32>
    %372 = math.exp %371 : vector<8x128xf32>
    %373 = arith.mulf %368, %372 : vector<8x128xf32>
    %cst_161 = arith.constant 1.000000e+00 : f32
    %374 = vector.broadcast %cst_161 : f32 to vector<8x128xf32>
    %375 = arith.subf %374, %373 : vector<8x128xf32>
    %cst_162 = arith.constant 0.000000e+00 : f32
    %376 = vector.broadcast %cst_162 : f32 to vector<8x128xf32>
    %377 = arith.cmpf oge, %347, %376 : vector<8x128xf32>
    %cst_163 = arith.constant 0.000000e+00 : f32
    %378 = vector.broadcast %cst_163 : f32 to vector<8x128xf32>
    %379 = arith.subf %378, %375 : vector<8x128xf32>
    %380 = arith.select %377, %375, %379 : vector<8x128xi1>, vector<8x128xf32>
    %cst_164 = arith.constant 1.000000e+00 : f32
    %381 = vector.broadcast %cst_164 : f32 to vector<8x128xf32>
    %382 = arith.addf %381, %380 : vector<8x128xf32>
    %383 = arith.mulf %345, %382 : vector<8x128xf32>
    %c1_165 = arith.constant 1 : index
    %c0_166 = arith.constant 0 : index
    %c0_167 = arith.constant 0 : index
    %384 = vector.load %arg13[%c1_165, %c0_166, %c0_167] : memref<2x128x32xf32, #tpu.memory_space<vmem>>, vector<1x128x32xf32>
    %385 = vector.shape_cast %384 : vector<1x128x32xf32> to vector<128x32xf32>
    %cst_168 = arith.constant dense<0.000000e+00> : vector<8x32xf32>
    %386 = tpu.matmul %383, %385, %cst_168 {dimension_numbers = #tpu.dot_dimension_numbers<[1], [0], [0], [1], [0, 0, 1, 1], [], []>} : vector<8x128xf32>, vector<128x32xf32>, vector<8x32xf32> -> vector<8x32xf32>
    %387 = arith.addf %310, %386 : vector<8x32xf32>
    %c1_169 = arith.constant 1 : index
    %c0_170 = arith.constant 0 : index
    %c0_171 = arith.constant 0 : index
    %388 = vector.load %arg14[%c1_169, %c0_170, %c0_171] : memref<2x1x32xf32, #tpu.memory_space<vmem>>, vector<1x1x32xf32>
    %389 = vector.shape_cast %388 : vector<1x1x32xf32> to vector<1x32xf32>
    %390 = vector.broadcast %389 : vector<1x32xf32> to vector<8x32xf32>
    %391 = arith.addf %387, %390 : vector<8x32xf32>
    %c0_172 = arith.constant 0 : index
    %c0_173 = arith.constant 0 : index
    %392 = vector.load %arg15[%c0_172, %c0_173] : memref<1x32xf32, #tpu.memory_space<vmem>>, vector<1x32xf32>
    %c0_174 = arith.constant 0 : index
    %c0_175 = arith.constant 0 : index
    %393 = vector.load %arg16[%c0_174, %c0_175] : memref<1x32xf32, #tpu.memory_space<vmem>>, vector<1x32xf32>
    %cst_176 = arith.constant dense<0.000000e+00> : vector<8xf32>
    %394 = vector.multi_reduction <add>, %391, %cst_176 [1] : vector<8x32xf32> to vector<8xf32>
    %395 = vector.shape_cast %394 : vector<8xf32> to vector<8x1xf32>
    %cst_177 = arith.constant 3.200000e+01 : f32
    %396 = vector.broadcast %cst_177 : f32 to vector<8x1xf32>
    %397 = arith.divf %395, %396 : vector<8x1xf32>
    %398 = vector.broadcast %397 : vector<8x1xf32> to vector<8x32xf32>
    %399 = arith.subf %391, %398 : vector<8x32xf32>
    %400 = arith.mulf %399, %399 : vector<8x32xf32>
    %cst_178 = arith.constant dense<0.000000e+00> : vector<8xf32>
    %401 = vector.multi_reduction <add>, %400, %cst_178 [1] : vector<8x32xf32> to vector<8xf32>
    %402 = vector.shape_cast %401 : vector<8xf32> to vector<8x1xf32>
    %cst_179 = arith.constant 3.200000e+01 : f32
    %403 = vector.broadcast %cst_179 : f32 to vector<8x1xf32>
    %404 = arith.divf %402, %403 : vector<8x1xf32>
    %405 = vector.broadcast %397 : vector<8x1xf32> to vector<8x32xf32>
    %406 = arith.subf %391, %405 : vector<8x32xf32>
    %cst_180 = arith.constant 9.99999974E-6 : f32
    %407 = vector.broadcast %cst_180 : f32 to vector<8x1xf32>
    %408 = arith.addf %404, %407 : vector<8x1xf32>
    %409 = math.rsqrt %408 : vector<8x1xf32>
    %410 = vector.broadcast %409 : vector<8x1xf32> to vector<8x32xf32>
    %411 = arith.mulf %406, %410 : vector<8x32xf32>
    %412 = vector.broadcast %392 : vector<1x32xf32> to vector<8x32xf32>
    %413 = arith.mulf %411, %412 : vector<8x32xf32>
    %414 = vector.broadcast %393 : vector<1x32xf32> to vector<8x32xf32>
    %415 = arith.addf %413, %414 : vector<8x32xf32>
    %c0_181 = arith.constant 0 : index
    %c0_182 = arith.constant 0 : index
    %416 = vector.load %arg17[%c0_181, %c0_182] : memref<64x32xf32, #tpu.memory_space<vmem>>, vector<64x32xf32>
    %cst_183 = arith.constant dense<0.000000e+00> : vector<8x64xf32>
    %417 = tpu.matmul %415, %416, %cst_183 {dimension_numbers = #tpu.dot_dimension_numbers<[1], [1], [0], [0], [0, 0, 1, 0], [], []>} : vector<8x32xf32>, vector<64x32xf32>, vector<8x64xf32> -> vector<8x64xf32>
    %c0_184 = arith.constant 0 : index
    %c0_185 = arith.constant 0 : index
    %c0_186 = arith.constant 0 : index
    %418 = vector.load %arg18[%c0_184, %c0_185, %c0_186] : memref<1x8x64xf32, #tpu.memory_space<vmem>>, vector<1x8x64xf32>
    %419 = vector.shape_cast %418 : vector<1x8x64xf32> to vector<8x64xf32>
    %420 = vector.shape_cast %417 : vector<8x64xf32> to vector<1x8x64xf32>
    tpu.vector_store %arg18[%c0_184, %c0_185, %c0_186], %420 {strides = array<i32>} : memref<1x8x64xf32, #tpu.memory_space<vmem>>, vector<1x8x64xf32>,
    return
  }
  func.func @transform_0(%arg0: i32) -> (i32, i32, i32) {
    %c0_i32 = arith.constant 0 : i32
    %c0_i32_0 = arith.constant 0 : i32
    %c0_i32_1 = arith.constant 0 : i32
    return %arg0, %c0_i32, %c0_i32_0 : i32, i32, i32
  }
  func.func @transform_1(%arg0: i32) -> (i32, i32) {
    %c0_i32 = arith.constant 0 : i32
    %c0_i32_0 = arith.constant 0 : i32
    %c0_i32_1 = arith.constant 0 : i32
    return %c0_i32, %c0_i32_0 : i32, i32
  }
  func.func @transform_2(%arg0: i32) -> (i32, i32, i32) {
    %c0_i32 = arith.constant 0 : i32
    %c0_i32_0 = arith.constant 0 : i32
    %c0_i32_1 = arith.constant 0 : i32
    %c0_i32_2 = arith.constant 0 : i32
    return %c0_i32, %c0_i32_0, %c0_i32_1 : i32, i32, i32
  }
  func.func @transform_3(%arg0: i32) -> (i32, i32, i32) {
    %c0_i32 = arith.constant 0 : i32
    %c0_i32_0 = arith.constant 0 : i32
    %c0_i32_1 = arith.constant 0 : i32
    %c0_i32_2 = arith.constant 0 : i32
    return %c0_i32, %c0_i32_0, %c0_i32_1 : i32, i32, i32
  }
  func.func @transform_4(%arg0: i32) -> (i32, i32, i32) {
    %c0_i32 = arith.constant 0 : i32
    %c0_i32_0 = arith.constant 0 : i32
    %c0_i32_1 = arith.constant 0 : i32
    %c0_i32_2 = arith.constant 0 : i32
    return %c0_i32, %c0_i32_0, %c0_i32_1 : i32, i32, i32
  }
  func.func @transform_5(%arg0: i32) -> (i32, i32, i32) {
    %c0_i32 = arith.constant 0 : i32
    %c0_i32_0 = arith.constant 0 : i32
    %c0_i32_1 = arith.constant 0 : i32
    %c0_i32_2 = arith.constant 0 : i32
    return %c0_i32, %c0_i32_0, %c0_i32_1 : i32, i32, i32
  }
  func.func @transform_6(%arg0: i32) -> (i32, i32, i32) {
    %c0_i32 = arith.constant 0 : i32
    %c0_i32_0 = arith.constant 0 : i32
    %c0_i32_1 = arith.constant 0 : i32
    %c0_i32_2 = arith.constant 0 : i32
    return %c0_i32, %c0_i32_0, %c0_i32_1 : i32, i32, i32
  }
  func.func @transform_7(%arg0: i32) -> (i32, i32, i32) {
    %c0_i32 = arith.constant 0 : i32
    %c0_i32_0 = arith.constant 0 : i32
    %c0_i32_1 = arith.constant 0 : i32
    %c0_i32_2 = arith.constant 0 : i32
    return %c0_i32, %c0_i32_0, %c0_i32_1 : i32, i32, i32
  }
  func.func @transform_8(%arg0: i32) -> (i32, i32, i32) {
    %c0_i32 = arith.constant 0 : i32
    %c0_i32_0 = arith.constant 0 : i32
    %c0_i32_1 = arith.constant 0 : i32
    %c0_i32_2 = arith.constant 0 : i32
    return %c0_i32, %c0_i32_0, %c0_i32_1 : i32, i32, i32
  }
  func.func @transform_9(%arg0: i32) -> (i32, i32, i32) {
    %c0_i32 = arith.constant 0 : i32
    %c0_i32_0 = arith.constant 0 : i32
    %c0_i32_1 = arith.constant 0 : i32
    %c0_i32_2 = arith.constant 0 : i32
    return %c0_i32, %c0_i32_0, %c0_i32_1 : i32, i32, i32
  }
  func.func @transform_10(%arg0: i32) -> (i32, i32, i32) {
    %c0_i32 = arith.constant 0 : i32
    %c0_i32_0 = arith.constant 0 : i32
    %c0_i32_1 = arith.constant 0 : i32
    %c0_i32_2 = arith.constant 0 : i32
    return %c0_i32, %c0_i32_0, %c0_i32_1 : i32, i32, i32
  }
  func.func @transform_11(%arg0: i32) -> (i32, i32, i32) {
    %c0_i32 = arith.constant 0 : i32
    %c0_i32_0 = arith.constant 0 : i32
    %c0_i32_1 = arith.constant 0 : i32
    %c0_i32_2 = arith.constant 0 : i32
    return %c0_i32, %c0_i32_0, %c0_i32_1 : i32, i32, i32
  }
  func.func @transform_12(%arg0: i32) -> (i32, i32, i32) {
    %c0_i32 = arith.constant 0 : i32
    %c0_i32_0 = arith.constant 0 : i32
    %c0_i32_1 = arith.constant 0 : i32
    %c0_i32_2 = arith.constant 0 : i32
    return %c0_i32, %c0_i32_0, %c0_i32_1 : i32, i32, i32
  }
  func.func @transform_13(%arg0: i32) -> (i32, i32, i32) {
    %c0_i32 = arith.constant 0 : i32
    %c0_i32_0 = arith.constant 0 : i32
    %c0_i32_1 = arith.constant 0 : i32
    %c0_i32_2 = arith.constant 0 : i32
    return %c0_i32, %c0_i32_0, %c0_i32_1 : i32, i32, i32
  }
  func.func @transform_14(%arg0: i32) -> (i32, i32) {
    %c0_i32 = arith.constant 0 : i32
    %c0_i32_0 = arith.constant 0 : i32
    %c0_i32_1 = arith.constant 0 : i32
    return %c0_i32, %c0_i32_0 : i32, i32
  }
  func.func @transform_15(%arg0: i32) -> (i32, i32) {
    %c0_i32 = arith.constant 0 : i32
    %c0_i32_0 = arith.constant 0 : i32
    %c0_i32_1 = arith.constant 0 : i32
    return %c0_i32, %c0_i32_0 : i32, i32
  }
  func.func @transform_16(%arg0: i32) -> (i32, i32) {
    %c0_i32 = arith.constant 0 : i32
    %c0_i32_0 = arith.constant 0 : i32
    %c0_i32_1 = arith.constant 0 : i32
    return %c0_i32, %c0_i32_0 : i32, i32
  }
  func.func @transform_17(%arg0: i32) -> (i32, i32, i32) {
    %c0_i32 = arith.constant 0 : i32
    %c0_i32_0 = arith.constant 0 : i32
    %c0_i32_1 = arith.constant 0 : i32
    return %arg0, %c0_i32, %c0_i32_0 : i32, i32, i32
  }
}

</mosaic_0001>

<bundles_post_ra>
// kernel: gpt_forward.1
= control target key start
LH: loop header
LB: loop body
LE: loop exit
PB: predicated region body
PF: predicated region fallthrough
CT: control target
= control target key end

     0   :  { %s4290_s0 = inlined_call_operand.vmem [shape: f32[2,8,32], index: 0, kind: input, shape index: {}]   ;;  %s4291_s1 = inlined_call_operand.vmem [shape: f32[8,32], index: 1, kind: input, shape index: {}]   ;;  %s4292_s2 = inlined_call_operand.vmem [shape: f32[2,1,32], index: 2, kind: input, shape index: {}]   ;;  %s4293_s3 = inlined_call_operand.vmem [shape: f32[2,1,32], index: 3, kind: input, shape index: {}]   ;;  %s4294_s4 = inlined_call_operand.vmem [shape: f32[2,32,64], index: 4, kind: input, shape index: {}]   ;;  %s4295_s5 = inlined_call_operand.vmem [shape: f32[2,1,64], index: 5, kind: input, shape index: {}]   ;;  %s4296_s6 = inlined_call_operand.vmem [shape: f32[2,32,32], index: 6, kind: input, shape index: {}]   ;;  %s4297_s7 = inlined_call_operand.vmem [shape: f32[2,1,32], index: 7, kind: input, shape index: {}]   ;;  %s4298_s8 = inlined_call_operand.vmem [shape: f32[2,1,32], index: 8, kind: input, shape index: {}]   ;;  %s4299_s9 = inlined_call_operand.vmem [shape: f32[2,1,32], index: 9, kind: input, shape index: {}]   ;;  %s4300_s10 = inlined_call_operand.vmem [shape: f32[2,32,128], index: 10, kind: input, shape index: {}]   ;;  %s4301_s11 = inlined_call_operand.vmem [shape: f32[2,1,128], index: 11, kind: input, shape index: {}]   ;;  %s4302_s12 = inlined_call_operand.vmem [shape: f32[2,128,32], index: 12, kind: input, shape index: {}]   ;;  %s4303_s13 = inlined_call_operand.vmem [shape: f32[2,1,32], index: 13, kind: input, shape index: {}]   ;;  %s4304_s14 = inlined_call_operand.vmem [shape: f32[1,32], index: 14, kind: input, shape index: {}]   ;;  %s4305_s15 = inlined_call_operand.vmem [shape: f32[1,32], index: 15, kind: input, shape index: {}]   ;;  %s4306_s16 = inlined_call_operand.vmem [shape: f32[64,32], index: 16, kind: input, shape index: {}]   ;;  %s4307_s17 = inlined_call_operand.hbm [shape: f32[2,8,64], index: 17, kind: output, shape index: {}]  }
   0x1   :  { %4320 = sst [smem:[#allocation8_spill]] %s4290_s0 }
   0x2   :  { %4321 = sst [smem:[#allocation9_spill]] %s4291_s1 }
   0x3   :  { %4322 = sst [smem:[#allocation10_spill]] %s4292_s2 }
   0x4   :  { %4323 = sst [smem:[#allocation11_spill]] %s4293_s3 }
   0x5   :  { %22 = vsyncpa [#allocation3], 0 }
   0x6   :  { %24 = vsyncpa [#allocation3 + $0x1], 0  ;;  %s3678_s24 = smov 0   ;;  %s3680_s25 = smov 0  }
   0x7   :  { %s3682_s26 = smov 0   ;;  %s3684_s27 = smov 0  }
   0x8 LB: > { %4324 = sst [smem:[#allocation5_spill]] %s3569_s26  ;;  %s3699_s28 = sadd.s32 4294967295, %s3573_s27   ;;  %s3573_s27 = sphi %s3684_s27, %s4342_s27   ;;  %s3569_s26 = sphi %s3682_s26, %s4344_s26   ;;  %s3565_s25 = sphi %s3680_s25, %s4346_s25   ;;  %s3561_s24 = sphi %s3678_s24, %s4345_s24  }
   0x9   : > { %s2969_s29 = sadd.s32 4294967294, %s3573_s27   ;;  %s3703_s0 = sadd.s32 1, %s3573_s27  }
   0xa   : > { %4325 = sst [smem:[#allocation6_spill]] %s3703_s0  ;;  %s399_s30 = sadd.s32 1, %s3569_s26 }
   0xb   : > { %s396_s18 = ssub.s32 %s3573_s27, %s3703_s0  ;;  %p409_p0 = scmp.ne.s32.totalorder %s3569_s26, %s3565_s25 }
   0xc   : > { %p397_p1 = scmp.eq.s32.totalorder %s396_s18, 0  ;;  %p410_p2 = scmp.eq.s32.totalorder %s3699_s28, 1 }
   0xd   : > { %p415_p3 = scmp.ne.s32.totalorder %s3565_s25, %s3561_s24  ;;  %p416_p4 = scmp.eq.s32.totalorder %s2969_s29, 1 }
   0xe   : > { %s3714_s19 = scalar_select %p397_p1, %s3569_s26, %s399_s30  }
   0xf   : > { %p3716_p5 = por %p410_p2, %p409_p0  ;;  %p3720_p6 = por %p416_p4, %p415_p3 }
  0x10   : > { %4326 = sst [smem:[#allocation7_spill]] %s3714_s19  ;;  %p2972_p7 = scmp.ge.s32.totalorder %s3573_s27, 1 }
  0x11   : > { %p489_p8 = scmp.lt.s32.totalorder %s3573_s27, 3 }
  0x13   : > { %p490_p9 = pnand %p2972_p7, %p489_p8 }
  0x14   : > { %p540_p10 = scmp.lt.s32.totalorder (!%p490_p9), %s3699_s28, 1  ;;  %s4329_s30 = sld [smem:[#allocation9_spill]] (!%p490_p9) }
  0x15   : > { %493 = sbr.rel (%p490_p9) target bundleno = 6356 (0x18d4), region = 88  ;;  %s4330_s26 = sld [smem:[#allocation8_spill]] (!%p490_p9) }
  0x16   : > { %s4331_s2 = sld [smem:[#allocation10_spill]] (!%p490_p9)  ;;  %s3578_s29 = smov (!%p490_p9), 96  }
  0x17   : > { %s4332_s3 = sld [smem:[#allocation11_spill]] (!%p490_p9)  ;;  %s4312_s18 = smov (!%p490_p9), 112  }
  0x18   : > { %s4318_s23 = smov (!%p490_p9), 80   ;;  %s4339_s19 = smov (!%p490_p9), 72  }
  0x1a   : > { %s541_s21 = scalar_select %p540_p10, %s3699_s28, 1  ;;  %v545_v0 = vld [vmem:[%s4329_s30] sm:$0xff]  ;;  %vm549_vm0 = vcmask 261120   ;;  %v581_v9 = vld [vmem:[%s4294_s4 + $0x18] sm:$0xff]  ;;  %v3575_v10 = vmov 0.0   ;;  %v580_v11 = vld [vmem:[%s4294_s4 + $0x10] sm:$0xff] }
  0x1b   : > { %3177 = vmatprep.subr.mxu0 %v3575_v10  ;;  %vm3576_vm1 = vmmov 0   ;;  %3188 = vmatprep.subr.mxu1 %v3575_v10  ;;  %v579_v12 = vld [vmem:[%s4294_s4 + $0x8] sm:$0xff]  ;;  %v578_v13 = vld [vmem:[%s4294_s4] sm:$0xff]  ;;  %s4319_s30 = smov 120   ;;  %vm665_vm2 = vcmask 64512   ;;  %vm1325_vm3 = vcmask 130048  }
  0x1c   : > { %s2974_s22 = sshll.u32 %s541_s21, 3  ;;  %3185 = vmatprep.mubr.msk.f32.mxu0 %vm3576_vm1, %v3575_v10  ;;  %3178 = vmatpush3.msra.mxu0 %v581_v9  ;;  %v2975_v18 = vld [vmem:[%s4331_s2] ss:$0 sm:$0xff]  ;;  %s4313_s21 = smov 104   ;;  %vm1327_vm4 = vcmask 195584   ;;  %vm2894_vm7 = vcmask 523264  }
  0x1d   : > { %s543_s0 = scalar_lea.vmem %s4330_s26, %s2974_s22  ;;  %3179 = vmatprep.subr.mxu0 %v3575_v10  ;;  %3190 = vmatprep.mubr.msk.f32.mxu1 %vm3576_vm1, %v3575_v10  ;;  %v2976_v20 = vld [vmem:[%s4332_s3] ss:$0 sm:$0xff]  ;;  %s4314_s22 = smov 88  }
  0x1e   : > { %v544_v1 = vld [vmem:[%s543_s0] sm:$0xff]  ;;  %3180 = vmatpush3.msra.mxu0 %v580_v11  ;;  %s4311_s26 = smov 72   ;;  %s4335_s0 = smov 88  }
  0x1f   : > { %v3734_v2 = vadd.f32 %v545_v0, %v544_v1  ;;  %3181 = vmatprep.subr.mxu0 %v3575_v10  ;;  %v2977_v23 = vld [vmem:[%s4295_s5] ss:$0 sm:$0xff] }
  0x20   : > { %3182 = vmatpush3.msra.mxu0 %v579_v12 }
  0x21   : > { %v550_v3 = vsel %vm549_vm0, %v3734_v2, 0.0  ;;  %3183 = vmatprep.subr.mxu0 %v3575_v10 }
  0x22   : > { %551 = vadd.xlane.f32.xlu0 %v550_v3  ;;  %3184 = vmatpush3.msra.mxu0 %v578_v13 }
  0x23   : > { %3198 = vmatprep.subr.mxu0 %v3575_v10 }
  0xab   : > { %v552_v4 = vpop.xlane.xlu0 %551 }
  0xac   : > { %v554_v5 = vmul.f32 0.03125, %v552_v4 }
  0xae   : > { %v555_v6 = vsub.f32 %v3734_v2, %v554_v5 }
  0xb0   : > { %v556_v7 = vmul.f32 %v555_v6, %v555_v6 }
  0xb2   : > { %v557_v8 = vsel %vm549_vm0, %v556_v7, 0.0 }
  0xb3   : > { %558 = vadd.xlane.f32.xlu0 %v557_v8 }
 0x13c   : > { %v559_v14 = vpop.xlane.xlu0 %558 }
 0x13d   : > { %v560_v15 = vmul.f32 0.03125, %v559_v14 }
 0x13f   : > { %v561_v16 = vadd.f32 1e-05, %v560_v15 }
 0x141   : > { %3463 = vrsqrt.f32 %v561_v16 }
 0x14e   : > { %v3464_v17 = vpop.eup %3463 }
 0x14f   : > { %v563_v19 = vmul.f32 %v3464_v17, %v555_v6 }
 0x151   : > { %v570_v21 = vmul.f32 %v2975_v18, %v563_v19 }
 0x153   : > { %v577_v22 = vadd.f32 %v2976_v20, %v570_v21  ;;  %v1332_v20 = vld [vmem:[%s4296_s6 + $0x18] sm:$0xff]  ;;  %v1331_v21 = vld [vmem:[%s4296_s6 + $0x10] sm:$0xff] }
 0x155   : > { %3186 = vmatmul.mubr.msk.f32.vlgmr.msra.gmra.mxu0 %vm549_vm0, %v577_v22  ;;  %v1330_v22 = vld [vmem:[%s4296_s6 + $0x8] sm:$0xff] }
 0x156   : > { %3200 = vmatprep.mubr.msk.f32.mxu0 %vm3576_vm1, %v3575_v10 }
 0x215   : > { %v658_v24 = vpop.f32.mrf.mxu0 }
 0x216   : > { %v3774_v25 = vadd.f32 %v2977_v23, %v658_v24  ;;  %v1329_v24 = vld [vmem:[%s4296_s6] sm:$0xff] }
 0x217   : > { %v3187_v26 = vpop.f32.mrf.mxu0 }
 0x218   : > { %989 = vrot.lane.b32.xlu0 %v3774_v25, %s4314_s22  ;;  %663 = vrot.lane.b32.xlu1 %v3774_v25, %s3578_s29  ;;  %s4316_s22 = smov 16  }
 0x21c   : > { %828 = vrot.lane.b32.xlu1 %v3774_v25, %s4319_s30  ;;  %s4341_s30 = smov 24  }
 0x220   : > { %987 = vrot.lane.b32.xlu1 %v3774_v25, %s4312_s18  ;;  %s4317_s18 = smov 8  }
 0x224   : > { %1153 = vrot.lane.b32.xlu1 %v3774_v25, %s4313_s21  ;;  %s4315_s21 = smov 24  }
 0x28a   : > { %v664_v27 = vpop.permute.xlu1 %663  ;;  %v990_v29 = vpop.permute.xlu0 %989 }
 0x28b   : > { %3189 = vmatpush3.xpose.msk.msra.mxu1 %vm665_vm2, %v664_v27  ;;  %3199 = vmatpush3.xpose.msk.msra.mxu0 %vm665_vm2, %v664_v27 }
 0x28c   : > { %3208 = vmatprep.subr.mxu0 %v3575_v10  ;;  %3193 = vmatprep.subr.mxu1 %v3575_v10 }
 0x28e   : > { %3191 = vmatmul.mubr.msk.f32.vlgmr.msra.gmra.mxu1 %vm665_vm2, %v3774_v25  ;;  %v829_v28 = vpop.permute.xlu1 %828 }
 0x28f   : > { %3201 = vmatmul.mubr.msk.f32.vlgmr.msra.gmra.mxu0 %vm665_vm2, %v829_v28  ;;  %3195 = vmatprep.mubr.msk.f32.mxu1 %vm3576_vm1, %v3575_v10 }
 0x290   : > { %3209 = vmatpush3.xpose.msk.msra.mxu0 %vm665_vm2, %v990_v29  ;;  %3210 = vmatprep.mubr.msk.f32.mxu0 %vm3576_vm1, %v3575_v10 }
 0x291   : > { %3218 = vmatprep.subr.mxu0 %v3575_v10 }
 0x292   : > { %v988_v30 = vpop.permute.xlu1 %987 }
 0x293   : > { %3211 = vmatmul.mubr.msk.f32.vlgmr.msra.gmra.mxu0 %vm665_vm2, %v988_v30 }
 0x294   : > { %3219 = vmatpush3.xpose.msk.msra.mxu0 %vm665_vm2, %v990_v29  ;;  %3220 = vmatprep.mubr.msk.f32.mxu0 %vm3576_vm1, %v3575_v10 }
 0x295   : > { %3228 = vmatprep.subr.mxu0 %v3575_v10 }
 0x296   : > { %v1154_v31 = vpop.permute.xlu1 %1153 }
 0x297   : > { %3221 = vmatmul.mubr.msk.f32.vlgmr.msra.gmra.mxu0 %vm665_vm2, %v1154_v31 }
 0x298   : > { %3236 = vmatprep.mubr.msk.f32.mxu0 %vm3576_vm1, %v3575_v10  ;;  %3229 = vmatpush3.msra.mxu0 %v1332_v20 }
 0x299   : > { %3230 = vmatprep.subr.mxu0 %v3575_v10 }
 0x29a   : > { %3231 = vmatpush3.msra.mxu0 %v1331_v21 }
 0x29b   : > { %3232 = vmatprep.subr.mxu0 %v3575_v10 }
 0x29c   : > { %3233 = vmatpush3.msra.mxu0 %v1330_v22 }
 0x29d   : > { %3234 = vmatprep.subr.mxu0 %v3575_v10 }
 0x29e   : > { %3235 = vmatpush3.msra.mxu0 %v1329_v24 }
 0x29f   : > { %3250 = vmatprep.subr.mxu0 %v3575_v10 }
 0x34e   : > { %v736_v32 = vpop.f32.mrf.mxu1 }
 0x34f   : > { %v740_v33 = vmul.f32 0.35355338, %v736_v32  ;;  %v898_v34 = vpop.f32.mrf.mxu0 }
 0x350   : > { %v902_v35 = vmul.f32 0.35355338, %v898_v34  ;;  %v3192_v36 = vpop.f32.mrf.mxu1 }
 0x351   : > { %v3202_v37 = vpop.f32.mrf.mxu0  ;;  %v741_v38 = vsel %vm665_vm2, %v740_v33, -inf }
 0x352   : > { %742 = vmax.xlane.f32.xlu1 %v741_v38  ;;  %v903_v39 = vsel %vm665_vm2, %v902_v35, -inf }
 0x353   : > { %904 = vmax.xlane.f32.xlu0 %v903_v39  ;;  %v1061_v40 = vpop.f32.mrf.mxu0  ;;  %v2992_v39 = vld [vmem:[%s4297_s7] ss:$0 sm:$0xff] }
 0x354   : > { %v1065_v41 = vmul.f32 0.35355338, %v1061_v40 }
 0x355   : > { %v3212_v42 = vpop.f32.mrf.mxu0 }
 0x356   : > { %v1066_v43 = vsel %vm665_vm2, %v1065_v41, -inf }
 0x357   : > { %1067 = vmax.xlane.f32.xlu1 %v1066_v43  ;;  %v1223_v44 = vpop.f32.mrf.mxu0 }
 0x358   : > { %v1227_v45 = vmul.f32 0.35355338, %v1223_v44 }
 0x359   : > { %v3222_v46 = vpop.f32.mrf.mxu0 }
 0x35a   : > { %v1228_v47 = vsel %vm665_vm2, %v1227_v45, -inf }
 0x35b   : > { %1229 = vmax.xlane.f32.xlu1 %v1228_v47 }
 0x3db   : > { %v743_v48 = vpop.xlane.xlu1 %742 }
 0x3dc   : > { %v744_v49 = vsub.f32 %v740_v33, %v743_v48  ;;  %v905_v50 = vpop.xlane.xlu0 %904 }
 0x3dd   : > { %v906_v51 = vsub.f32 %v902_v35, %v905_v50  ;;  %v1445_v50 = vld [vmem:[%s4300_s10 + $0x8] sm:$0xff] }
 0x3de   : > { %v745_v52 = vmul.f32 1.442695, %v744_v49  ;;  %v1447_v49 = vld [vmem:[%s4300_s10 + $0x18] sm:$0xff] }
 0x3df   : > { %v907_v53 = vmul.f32 1.442695, %v906_v51  ;;  %v1444_v51 = vld [vmem:[%s4300_s10] sm:$0xff] }
 0x3e0   : > { %3465 = vpow2.f32 %v745_v52  ;;  %v1068_v54 = vpop.xlane.xlu1 %1067 }
 0x3e1   : > { %3467 = vpow2.f32 %v907_v53  ;;  %v1069_v55 = vsub.f32 %v1065_v41, %v1068_v54 }
 0x3e3   : > { %v1070_v56 = vmul.f32 1.442695, %v1069_v55 }
 0x3e4   : > { %v1230_v57 = vpop.xlane.xlu1 %1229 }
 0x3e5   : > { %3469 = vpow2.f32 %v1070_v56  ;;  %v1231_v58 = vsub.f32 %v1227_v45, %v1230_v57  ;;  %v2993_v56 = vld [vmem:[%s4298_s8] ss:$0 sm:$0xff] }
 0x3e7   : > { %v1232_v59 = vmul.f32 1.442695, %v1231_v58  ;;  %v2994_v58 = vld [vmem:[%s4299_s9] ss:$0 sm:$0xff] }
 0x3e9   : > { %3471 = vpow2.f32 %v1232_v59 }
 0x3ed   : > { %v3466_v60 = vpop.eup %3465 }
 0x3ee   : > { %v3468_v61 = vpop.eup %3467  ;;  %v747_v62 = vsel %vm665_vm2, %v3466_v60, 0.0 }
 0x3ef   : > { %748 = vadd.xlane.f32.xlu1 %v747_v62  ;;  %v909_v63 = vsel %vm665_vm2, %v3468_v61, 0.0  ;;  %v1569_v62 = vld [vmem:[%s4302_s12 + $0x70] sm:$0xff] }
 0x3f0   : > { %910 = vadd.xlane.f32.xlu0 %v909_v63  ;;  %v1568_v63 = vld [vmem:[%s4302_s12 + $0x68] sm:$0xff] }
 0x3f2   : > { %v3470_v0 = vpop.eup %3469 }
 0x3f3   : > { %v1072_v1 = vsel %vm665_vm2, %v3470_v0, 0.0 }
 0x3f4   : > { %1073 = vadd.xlane.f32.xlu1 %v1072_v1  ;;  %v1566_v1 = vld [vmem:[%s4302_s12 + $0x58] sm:$0xff] }
 0x3f6   : > { %v3472_v3 = vpop.eup %3471 }
 0x3f7   : > { %v1234_v4 = vsel %vm665_vm2, %v3472_v3, 0.0 }
 0x3f8   : > { %1235 = vadd.xlane.f32.xlu0 %v1234_v4  ;;  %v1564_v4 = vld [vmem:[%s4302_s12 + $0x48] sm:$0xff] }
 0x405   : > { %752 = vrot.lane.b32.xlu1 %v3774_v25, %s4318_s23  ;;  %s3069_s23 = sshll.u32 %s3699_s28, 7  ;;  %s3587_s28 = smov [#allocation2]  }
 0x40e   : > { %1077 = vrot.lane.b32.xlu0 %v3774_v25, %s4311_s26  ;;  %s4333_s26 = smov 120  }
 0x478   : > { %v749_v5 = vpop.xlane.xlu1 %748 }
 0x479   : > { %3473 = vrcp.f32 %v749_v5  ;;  %v911_v6 = vpop.xlane.xlu0 %910  ;;  %v1563_v5 = vld [vmem:[%s4302_s12 + $0x40] sm:$0xff] }
 0x47a   : > { %3475 = vrcp.f32 %v911_v6  ;;  %v1562_v6 = vld [vmem:[%s4302_s12 + $0x38] sm:$0xff] }
 0x47d   : > { %v1074_v7 = vpop.xlane.xlu1 %1073 }
 0x47e   : > { %3477 = vrcp.f32 %v1074_v7  ;;  %v1561_v7 = vld [vmem:[%s4302_s12 + $0x30] sm:$0xff] }
 0x481   : > { %v1236_v8 = vpop.xlane.xlu0 %1235  ;;  %v753_v9 = vpop.permute.xlu1 %752 }
 0x482   : > { %3194 = vmatpush3.msra.mxu1 %v753_v9  ;;  %3479 = vrcp.f32 %v1236_v8  ;;  %v1560_v8 = vld [vmem:[%s4302_s12 + $0x28] sm:$0xff] }
 0x483   : > { %3203 = vmatprep.subr.mxu1 %v3575_v10 }
 0x485   : > { %v1078_v16 = vpop.permute.xlu0 %1077 }
 0x486   : > { %v3474_v11 = vpop.eup %3473 }
 0x487   : > { %v751_v12 = vmul.f32 %v3474_v11, %v3466_v60  ;;  %v3476_v13 = vpop.eup %3475  ;;  %v1558_v11 = vld [vmem:[%s4302_s12 + $0x18] sm:$0xff] }
 0x488   : > { %v913_v14 = vmul.f32 %v3476_v13, %v3468_v61  ;;  %v1570_v61 = vld [vmem:[%s4302_s12 + $0x78] sm:$0xff]  ;;  %v1556_v13 = vld [vmem:[%s4302_s12 + $0x8] sm:$0xff] }
 0x489   : > { %3196 = vmatmul.mubr.msk.f32.vlgmr.msra.gmra.mxu1 %vm665_vm2, %v751_v12  ;;  %v1557_v12 = vld [vmem:[%s4302_s12 + $0x10] sm:$0xff] }
 0x48a   : > { %3204 = vmatpush3.msra.mxu1 %v753_v9  ;;  %3205 = vmatprep.mubr.msk.f32.mxu1 %vm3576_vm1, %v3575_v10  ;;  %v1559_v9 = vld [vmem:[%s4302_s12 + $0x20] sm:$0xff] }
 0x48b   : > { %3213 = vmatprep.subr.mxu1 %v3575_v10  ;;  %v3478_v15 = vpop.eup %3477 }
 0x48c   : > { %v1076_v17 = vmul.f32 %v3478_v15, %v3470_v0  ;;  %v1567_v0 = vld [vmem:[%s4302_s12 + $0x60] sm:$0xff] }
 0x48d   : > { %3206 = vmatmul.mubr.msk.f32.vlgmr.msra.gmra.mxu1 %vm665_vm2, %v913_v14  ;;  %v1555_v14 = vld [vmem:[%s4302_s12] sm:$0xff] }
 0x48e   : > { %3214 = vmatpush3.msra.mxu1 %v1078_v16  ;;  %3215 = vmatprep.mubr.msk.f32.mxu1 %vm3576_vm1, %v3575_v10  ;;  %v2995_v15 = vld [vmem:[%s4301_s11] ss:$0 sm:$0xff] }
 0x48f   : > { %3223 = vmatprep.subr.mxu1 %v3575_v10  ;;  %v3480_v18 = vpop.eup %3479 }
 0x490   : > { %v1238_v19 = vmul.f32 %v3480_v18, %v3472_v3  ;;  %v1565_v3 = vld [vmem:[%s4302_s12 + $0x50] sm:$0xff] }
 0x491   : > { %3216 = vmatmul.mubr.msk.f32.vlgmr.msra.gmra.mxu1 %vm665_vm2, %v1076_v17 }
 0x492   : > { %3224 = vmatpush3.msra.mxu1 %v1078_v16  ;;  %3225 = vmatprep.mubr.msk.f32.mxu1 %vm3576_vm1, %v3575_v10 }
 0x493   : > { %3239 = vmatprep.subr.mxu1 %v3575_v10 }
 0x495   : > { %3226 = vmatmul.mubr.msk.f32.vlgmr.msra.gmra.mxu1 %vm665_vm2, %v1238_v19 }
 0x496   : > { %3247 = vmatprep.mubr.msk.f32.mxu1 %vm3576_vm1, %v3575_v10  ;;  %3240 = vmatpush3.msra.mxu1 %v1447_v49 }
 0x497   : > { %3241 = vmatprep.subr.mxu1 %v3575_v10 }
 0x549   : > { %v824_v23 = vpop.f32.mrf.mxu1 }
 0x54b   : > { %v3197_v25 = vpop.f32.mrf.mxu1 }
 0x54d   : > { %v983_v26 = vpop.f32.mrf.mxu1 }
 0x54e   : > { %1313 = vrot.lane.b32.xlu1 %v983_v26, %s4317_s18  ;;  %s4336_s18 = smov 104  }
 0x54f   : > { %v3207_v27 = vpop.f32.mrf.mxu1 }
 0x551   : > { %v1149_v28 = vpop.f32.mrf.mxu1 }
 0x552   : > { %1317 = vrot.lane.b32.xlu1 %v1149_v28, %s4316_s22  ;;  %s4337_s22 = smov 112  }
 0x553   : > { %v3217_v29 = vpop.f32.mrf.mxu1 }
 0x555   : > { %v1308_v30 = vpop.f32.mrf.mxu1 }
 0x556   : > { %1321 = vrot.lane.b32.xlu0 %v1308_v30, %s4315_s21  ;;  %s4338_s21 = smov 8  }
 0x557   : > { %v3227_v31 = vpop.f32.mrf.mxu1 }
 0x5c0   : > { %v1314_v32 = vpop.permute.xlu1 %1313 }
 0x5c1   : > { %v1324_v34 = vsel %vm665_vm2, %v824_v23, %v1314_v32 }
 0x5c4   : > { %v1318_v33 = vpop.permute.xlu1 %1317 }
 0x5c5   : > { %v1326_v35 = vsel %vm1325_vm3, %v1324_v34, %v1318_v33 }
 0x5c8   : > { %v1322_v36 = vpop.permute.xlu0 %1321 }
 0x5c9   : > { %v1328_v37 = vsel %vm1327_vm4, %v1326_v35, %v1322_v36 }
 0x5ca   : > { %3237 = vmatmul.mubr.msk.f32.vlgmr.msra.gmra.mxu0 %vm549_vm0, %v1328_v37 }
 0x5cb   : > { %3282 = vmatprep.mubr.msk.f32.mxu0 %vm3576_vm1, %v3575_v10  ;;  %3251 = vmatpush3.msra.mxu0 %v1570_v61 }
 0x5cc   : > { %3252 = vmatprep.subr.mxu0 %v3575_v10 }
 0x5cd   : > { %3253 = vmatpush3.msra.mxu0 %v1569_v62  ;;  %v3000_v62 = vld [vmem:[%s4331_s2 + $0x1] ss:$0 sm:$0xff] }
 0x5ce   : > { %3254 = vmatprep.subr.mxu0 %v3575_v10 }
 0x5cf   : > { %3255 = vmatpush3.msra.mxu0 %v1568_v63 }
 0x5d0   : > { %3256 = vmatprep.subr.mxu0 %v3575_v10 }
 0x5d1   : > { %3257 = vmatpush3.msra.mxu0 %v1567_v0  ;;  %v3001_v0 = vld [vmem:[%s4332_s3 + $0x1] ss:$0 sm:$0xff] }
 0x5d2   : > { %3258 = vmatprep.subr.mxu0 %v3575_v10 }
 0x5d3   : > { %3259 = vmatpush3.msra.mxu0 %v1566_v1 }
 0x5d4   : > { %3260 = vmatprep.subr.mxu0 %v3575_v10 }
 0x5d5   : > { %3261 = vmatpush3.msra.mxu0 %v1565_v3 }
 0x5d6   : > { %3262 = vmatprep.subr.mxu0 %v3575_v10 }
 0x5d7   : > { %3263 = vmatpush3.msra.mxu0 %v1564_v4  ;;  %v3007_v4 = vld [vmem:[%s4295_s5 + $0x1] ss:$0 sm:$0xff] }
 0x5d8   : > { %3264 = vmatprep.subr.mxu0 %v3575_v10 }
 0x5d9   : > { %3265 = vmatpush3.msra.mxu0 %v1563_v5 }
 0x5da   : > { %3266 = vmatprep.subr.mxu0 %v3575_v10 }
 0x5db   : > { %3267 = vmatpush3.msra.mxu0 %v1562_v6 }
 0x5dc   : > { %3268 = vmatprep.subr.mxu0 %v3575_v10 }
 0x5dd   : > { %3269 = vmatpush3.msra.mxu0 %v1561_v7 }
 0x5de   : > { %3270 = vmatprep.subr.mxu0 %v3575_v10 }
 0x5df   : > { %3271 = vmatpush3.msra.mxu0 %v1560_v8 }
 0x5e0   : > { %3272 = vmatprep.subr.mxu0 %v3575_v10 }
 0x5e1   : > { %3273 = vmatpush3.msra.mxu0 %v1559_v9 }
 0x5e2   : > { %3274 = vmatprep.subr.mxu0 %v3575_v10 }
 0x5e3   : > { %3275 = vmatpush3.msra.mxu0 %v1558_v11 }
 0x5e4   : > { %3276 = vmatprep.subr.mxu0 %v3575_v10 }
 0x5e5   : > { %3277 = vmatpush3.msra.mxu0 %v1557_v12 }
 0x5e6   : > { %3278 = vmatprep.subr.mxu0 %v3575_v10 }
 0x5e7   : > { %3279 = vmatpush3.msra.mxu0 %v1556_v13 }
 0x5e8   : > { %3280 = vmatprep.subr.mxu0 %v3575_v10 }
 0x5e9   : > { %3281 = vmatpush3.msra.mxu0 %v1555_v14 }
 0x5ea   : > { %3326 = vmatprep.subr.mxu0 %v3575_v10 }
 0x68a   : > { %v1402_v38 = vpop.f32.mrf.mxu0 }
 0x68b   : > { %v1406_v40 = vadd.f32 %v1402_v38, %v3734_v2  ;;  %v1446_v2 = vld [vmem:[%s4300_s10 + $0x10] sm:$0xff] }
 0x68c   : > { %v3238_v41 = vpop.f32.mrf.mxu0  ;;  %3242 = vmatpush3.msra.mxu1 %v1446_v2 }
 0x68d   : > { %v3864_v42 = vadd.f32 %v2992_v39, %v1406_v40  ;;  %3243 = vmatprep.subr.mxu1 %v3575_v10 }
 0x68e   : > { %3244 = vmatpush3.msra.mxu1 %v1445_v50 }
 0x68f   : > { %v1417_v43 = vsel %vm549_vm0, %v3864_v42, 0.0  ;;  %3245 = vmatprep.subr.mxu1 %v3575_v10 }
 0x690   : > { %1418 = vadd.xlane.f32.xlu1 %v1417_v43  ;;  %3246 = vmatpush3.msra.mxu1 %v1444_v51 }
 0x691   : > { %3285 = vmatprep.subr.mxu1 %v3575_v10 }
 0x719   : > { %v1419_v44 = vpop.xlane.xlu1 %1418 }
 0x71a   : > { %v1420_v45 = vmul.f32 0.03125, %v1419_v44 }
 0x71c   : > { %v1421_v46 = vsub.f32 %v3864_v42, %v1420_v45 }
 0x71e   : > { %v1422_v47 = vmul.f32 %v1421_v46, %v1421_v46 }
 0x720   : > { %v1423_v48 = vsel %vm549_vm0, %v1422_v47, 0.0 }
 0x721   : > { %1424 = vadd.xlane.f32.xlu0 %v1423_v48 }
 0x7aa   : > { %v1425_v52 = vpop.xlane.xlu0 %1424 }
 0x7ab   : > { %v1426_v53 = vmul.f32 0.03125, %v1425_v52 }
 0x7ad   : > { %v1427_v54 = vadd.f32 1e-05, %v1426_v53 }
 0x7af   : > { %3481 = vrsqrt.f32 %v1427_v54 }
 0x7bc   : > { %v3482_v55 = vpop.eup %3481 }
 0x7bd   : > { %v1429_v57 = vmul.f32 %v3482_v55, %v1421_v46  ;;  %v2997_v46 = vld [vmem:[%s4303_s13] ss:$0 sm:$0xff]  ;;  %v3005_v55 = vld [vmem:[%s4294_s4 + $0x38] sm:$0xff] }
 0x7bf   : > { %v1436_v59 = vmul.f32 %v2993_v56, %v1429_v57  ;;  %v3003_v56 = vld [vmem:[%s4294_s4 + $0x28] sm:$0xff]  ;;  %v3002_v57 = vld [vmem:[%s4294_s4 + $0x20] sm:$0xff] }
 0x7c1   : > { %v1443_v60 = vadd.f32 %v2994_v58, %v1436_v59 }
 0x7c3   : > { %3248 = vmatmul.mubr.msk.f32.vlgmr.msra.gmra.mxu1 %vm549_vm0, %v1443_v60 }
 0x7c4   : > { %3293 = vmatprep.mubr.msk.f32.mxu1 %vm3576_vm1, %v3575_v10  ;;  %3286 = vmatpush3.msra.mxu1 %v3005_v55 }
 0x7c5   : > { %3287 = vmatprep.subr.mxu1 %v3575_v10 }
 0x883   : > { %v1524_v16 = vpop.f32.mrf.mxu1 }
 0x884   : > { %v1525_v17 = vadd.f32 %v2995_v15, %v1524_v16 }
 0x885   : > { %v3249_v18 = vpop.f32.mrf.mxu1 }
 0x886   : > { %v1529_v19 = vmul.f32 0.70710677, %v1525_v17  ;;  %v1528_v41 = vmul.f32 0.5, %v1525_v17 }
 0x888   : > { %v1530_v20 = vand.u32 2147483647, %v1529_v19  ;;  %vm1550_vm5 = vcmp.ge.f32.partialorder %v1529_v19, 0.0 }
 0x88a   : > { %v1531_v21 = vmul.f32 0.3275911, %v1530_v20  ;;  %v1544_v23 = vmul.f32 %v1530_v20, %v1530_v20 }
 0x88c   : > { %v1532_v22 = vadd.f32 1.0, %v1531_v21  ;;  %v1545_v24 = vsub.f32 0.0, %v1544_v23 }
 0x88e   : > { %3483 = vrcp.f32 %v1532_v22  ;;  %v1546_v27 = vmul.f32 1.442695, %v1545_v24 }
 0x890   : > { %3485 = vpow2.f32 %v1546_v27 }
 0x89b   : > { %v3484_v25 = vpop.eup %3483 }
 0x89c   : > { %v1535_v26 = vmul.f32 1.0614054, %v3484_v25 }
 0x89d   : > { %v3486_v36 = vpop.eup %3485 }
 0x89e   : > { %v1536_v28 = vadd.f32 -1.4531521, %v1535_v26 }
 0x8a0   : > { %v1537_v29 = vmul.f32 %v3484_v25, %v1536_v28 }
 0x8a2   : > { %v1538_v30 = vadd.f32 1.4214138, %v1537_v29 }
 0x8a4   : > { %v1539_v31 = vmul.f32 %v3484_v25, %v1538_v30 }
 0x8a6   : > { %v1540_v32 = vadd.f32 -0.28449672, %v1539_v31 }
 0x8a8   : > { %v1541_v33 = vmul.f32 %v3484_v25, %v1540_v32 }
 0x8aa   : > { %v1542_v34 = vadd.f32 0.2548296, %v1541_v33 }
 0x8ac   : > { %v1543_v35 = vmul.f32 %v3484_v25, %v1542_v34 }
 0x8ae   : > { %v1548_v37 = vmul.f32 %v3486_v36, %v1543_v35 }
 0x8b0   : > { %v1549_v38 = vsub.f32 1.0, %v1548_v37 }
 0x8b2   : > { %v1551_v39 = vsub.f32 0.0, %v1549_v38 }
 0x8b4   : > { %v1552_v40 = vsel %vm1550_vm5, %v1549_v38, %v1551_v39 }
 0x8b5   : > { %v1553_v43 = vadd.f32 1.0, %v1552_v40 }
 0x8b7   : > { %v1554_v44 = vmul.f32 %v1553_v43, %v1528_v41 }
 0x8b9   : > { %3283 = vmatmul.mubr.f32.vlgmr.msra.gmra.mxu0 %v1554_v44 }
 0x8ba   : > { %3328 = vmatprep.mubr.msk.f32.mxu0 %vm3576_vm1, %v3575_v10 }
 0x979   : > { %v1637_v45 = vpop.f32.mrf.mxu0 }
 0x97a   : > { %v1641_v47 = vadd.f32 %v1637_v45, %v3864_v42  ;;  %v3004_v42 = vld [vmem:[%s4294_s4 + $0x30] sm:$0xff] }
 0x97b   : > { %v3284_v48 = vpop.f32.mrf.mxu0  ;;  %3288 = vmatpush3.msra.mxu1 %v3004_v42 }
 0x97c   : > { %v3968_v49 = vadd.f32 %v2997_v46, %v1641_v47  ;;  %3289 = vmatprep.subr.mxu1 %v3575_v10 }
 0x97d   : > { %3290 = vmatpush3.msra.mxu1 %v3003_v56 }
 0x97e   : > { %v1654_v2 = vsel %vm549_vm0, %v3968_v49, 0.0  ;;  %3291 = vmatprep.subr.mxu1 %v3575_v10 }
 0x97f   : > { %1655 = vadd.xlane.f32.xlu0 %v1654_v2  ;;  %3292 = vmatpush3.msra.mxu1 %v3002_v57 }
 0x980   : > { %3296 = vmatprep.subr.mxu1 %v3575_v10 }
 0xa08   : > { %v1656_v50 = vpop.xlane.xlu0 %1655 }
 0xa09   : > { %v1657_v51 = vmul.f32 0.03125, %v1656_v50 }
 0xa0b   : > { %v1658_v52 = vsub.f32 %v3968_v49, %v1657_v51 }
 0xa0d   : > { %v1659_v53 = vmul.f32 %v1658_v52, %v1658_v52 }
 0xa0f   : > { %v1660_v54 = vsel %vm549_vm0, %v1659_v53, 0.0 }
 0xa10   : > { %1661 = vadd.xlane.f32.xlu1 %v1660_v54 }
 0xa99   : > { %v1662_v58 = vpop.xlane.xlu1 %1661 }
 0xa9a   : > { %v1663_v59 = vmul.f32 0.03125, %v1662_v58 }
 0xa9c   : > { %v1664_v60 = vadd.f32 1e-05, %v1663_v59 }
 0xa9e   : > { %3487 = vrsqrt.f32 %v1664_v60 }
 0xaab   : > { %v3488_v61 = vpop.eup %3487 }
 0xaac   : > { %v1666_v63 = vmul.f32 %v3488_v61, %v1658_v52 }
 0xaae   : > { %v1673_v1 = vmul.f32 %v3000_v62, %v1666_v63 }
 0xab0   : > { %v1680_v3 = vadd.f32 %v3001_v0, %v1673_v1 }
 0xab2   : > { %3294 = vmatmul.mubr.msk.f32.vlgmr.msra.gmra.mxu1 %vm549_vm0, %v1680_v3 }
 0xab3   : > { %3298 = vmatprep.mubr.msk.f32.mxu1 %vm3576_vm1, %v3575_v10 }
 0xb72   : > { %v1763_v5 = vpop.f32.mrf.mxu1 }
 0xb73   : > { %v4002_v6 = vadd.f32 %v3007_v4, %v1763_v5  ;;  %v3024_v5 = vld [vmem:[%s4296_s6 + $0x38] sm:$0xff] }
 0xb74   : > { %v3295_v7 = vpop.f32.mrf.mxu1 }
 0xb75   : > { %1768 = vrot.lane.b32.xlu0 %v4002_v6, %s3578_s29  ;;  %s4334_s29 = smov 80   ;;  %v3022_v7 = vld [vmem:[%s4296_s6 + $0x28] sm:$0xff] }
 0xb79   : > { %1932 = vrot.lane.b32.xlu0 %v4002_v6, %s4333_s26 }
 0xbe7   : > { %v1769_v8 = vpop.permute.xlu0 %1768 }
 0xbe8   : > { %3297 = vmatpush3.xpose.msk.msra.mxu1 %vm665_vm2, %v1769_v8 }
 0xbe9   : > { %3301 = vmatprep.subr.mxu1 %v3575_v10 }
 0xbeb   : > { %3299 = vmatmul.mubr.msk.f32.vlgmr.msra.gmra.mxu1 %vm665_vm2, %v4002_v6  ;;  %v1933_v23 = vpop.permute.xlu0 %1932 }
 0xbec   : > { %3303 = vmatprep.mubr.msk.f32.mxu1 %vm3576_vm1, %v3575_v10 }
 0xcab   : > { %v1840_v9 = vpop.f32.mrf.mxu1 }
 0xcac   : > { %v1844_v11 = vmul.f32 0.35355338, %v1840_v9 }
 0xcad   : > { %v3300_v12 = vpop.f32.mrf.mxu1 }
 0xcae   : > { %v1845_v13 = vsel %vm665_vm2, %v1844_v11, -inf }
 0xcaf   : > { %1846 = vmax.xlane.f32.xlu1 %v1845_v13 }
 0xd38   : > { %v1847_v14 = vpop.xlane.xlu1 %1846 }
 0xd39   : > { %v1848_v15 = vsub.f32 %v1844_v11, %v1847_v14 }
 0xd3b   : > { %v1849_v16 = vmul.f32 1.442695, %v1848_v15 }
 0xd3d   : > { %3489 = vpow2.f32 %v1849_v16 }
 0xd4a   : > { %v3490_v17 = vpop.eup %3489 }
 0xd4b   : > { %v1851_v18 = vsel %vm665_vm2, %v3490_v17, 0.0 }
 0xd4c   : > { %1852 = vadd.xlane.f32.xlu1 %v1851_v18 }
 0xd5d   : > { %1856 = vrot.lane.b32.xlu1 %v4002_v6, %s4334_s29 }
 0xdd5   : > { %v1853_v19 = vpop.xlane.xlu1 %1852 }
 0xdd6   : > { %3491 = vrcp.f32 %v1853_v19 }
 0xdd9   : > { %v1857_v20 = vpop.permute.xlu1 %1856 }
 0xdda   : > { %3302 = vmatpush3.msra.mxu1 %v1857_v20 }
 0xddb   : > { %3306 = vmatprep.subr.mxu1 %v3575_v10 }
 0xde3   : > { %v3492_v21 = vpop.eup %3491 }
 0xde4   : > { %v1855_v22 = vmul.f32 %v3492_v21, %v3490_v17  ;;  %v3027_v21 = vld [vmem:[%s4297_s7 + $0x1] ss:$0 sm:$0xff] }
 0xde6   : > { %3304 = vmatmul.mubr.msk.f32.vlgmr.msra.gmra.mxu1 %vm665_vm2, %v1855_v22 }
 0xde7   : > { %3307 = vmatpush3.xpose.msk.msra.mxu1 %vm665_vm2, %v1769_v8  ;;  %3308 = vmatprep.mubr.msk.f32.mxu1 %vm3576_vm1, %v3575_v10  ;;  %v3021_v8 = vld [vmem:[%s4296_s6 + $0x20] sm:$0xff] }
 0xde8   : > { %3311 = vmatprep.subr.mxu1 %v3575_v10 }
 0xdea   : > { %3309 = vmatmul.mubr.msk.f32.vlgmr.msra.gmra.mxu1 %vm665_vm2, %v1933_v23 }
 0xdeb   : > { %3312 = vmatpush3.msra.mxu1 %v1857_v20  ;;  %3313 = vmatprep.mubr.msk.f32.mxu1 %vm3576_vm1, %v3575_v10 }
 0xdec   : > { %3316 = vmatprep.subr.mxu1 %v3575_v10 }
 0xea6   : > { %v4028_v24 = vpop.f32.mrf.mxu1 }
 0xea8   : > { %v3305_v25 = vpop.f32.mrf.mxu1 }
 0xeaa   : > { %v2002_v26 = vpop.f32.mrf.mxu1 }
 0xeab   : > { %v2006_v27 = vmul.f32 0.35355338, %v2002_v26 }
 0xeac   : > { %v3310_v28 = vpop.f32.mrf.mxu1 }
 0xead   : > { %v2007_v29 = vsel %vm665_vm2, %v2006_v27, -inf }
 0xeae   : > { %2008 = vmax.xlane.f32.xlu0 %v2007_v29 }
 0xec4   : > { %2093 = vrot.lane.b32.xlu0 %v4002_v6, %s4335_s0  ;;  %s4249_s0 = scalar_lea.hbm %s4307_s17, %s3069_s23 }
 0xec8   : > { %2257 = vrot.lane.b32.xlu0 %v4002_v6, %s4336_s18 }
 0xf37   : > { %v2009_v30 = vpop.xlane.xlu0 %2008 }
 0xf38   : > { %v2010_v31 = vsub.f32 %v2006_v27, %v2009_v30 }
 0xf3a   : > { %v2011_v32 = vmul.f32 1.442695, %v2010_v31  ;;  %v3035_v31 = vld [vmem:[%s4300_s10 + $0x38] sm:$0xff] }
 0xf3b   : > { %v2094_v33 = vpop.permute.xlu0 %2093 }
 0xf3c   : > { %3493 = vpow2.f32 %v2011_v32  ;;  %3327 = vmatpush3.xpose.msk.msra.mxu0 %vm665_vm2, %v2094_v33  ;;  %v3033_v32 = vld [vmem:[%s4300_s10 + $0x28] sm:$0xff] }
 0xf3d   : > { %3336 = vmatprep.subr.mxu0 %v3575_v10 }
 0xf3f   : > { %v2258_v34 = vpop.permute.xlu0 %2257 }
 0xf40   : > { %3329 = vmatmul.mubr.msk.f32.vlgmr.msra.gmra.mxu0 %vm665_vm2, %v2258_v34 }
 0xf41   : > { %3344 = vmatprep.mubr.msk.f32.mxu0 %vm3576_vm1, %v3575_v10  ;;  %3337 = vmatpush3.msra.mxu0 %v3024_v5 }
 0xf42   : > { %3338 = vmatprep.subr.mxu0 %v3575_v10 }
 0xf49   : > { %v3494_v35 = vpop.eup %3493 }
 0xf4a   : > { %v2013_v36 = vsel %vm665_vm2, %v3494_v35, 0.0 }
 0xf4b   : > { %2014 = vadd.xlane.f32.xlu1 %v2013_v36 }
 0xf5c   : > { %2091 = vrot.lane.b32.xlu1 %v4002_v6, %s4337_s22 }
 0xfd4   : > { %v2015_v37 = vpop.xlane.xlu1 %2014 }
 0xfd5   : > { %3495 = vrcp.f32 %v2015_v37 }
 0xfd8   : > { %v2092_v40 = vpop.permute.xlu1 %2091 }
 0xfe2   : > { %v3496_v38 = vpop.eup %3495 }
 0xfe3   : > { %v2017_v39 = vmul.f32 %v3496_v38, %v3494_v35  ;;  %v3030_v38 = vld [vmem:[%s4298_s8 + $0x1] ss:$0 sm:$0xff] }
 0xfe5   : > { %3314 = vmatmul.mubr.msk.f32.vlgmr.msra.gmra.mxu1 %vm665_vm2, %v2017_v39 }
 0xfe6   : > { %3317 = vmatpush3.xpose.msk.msra.mxu1 %vm665_vm2, %v2094_v33  ;;  %3318 = vmatprep.mubr.msk.f32.mxu1 %vm3576_vm1, %v3575_v10  ;;  %v3032_v33 = vld [vmem:[%s4300_s10 + $0x20] sm:$0xff] }
 0xfe7   : > { %3321 = vmatprep.subr.mxu1 %v3575_v10 }
 0xfe9   : > { %3319 = vmatmul.mubr.msk.f32.vlgmr.msra.gmra.mxu1 %vm665_vm2, %v2092_v40  ;;  %v3031_v40 = vld [vmem:[%s4299_s9 + $0x1] ss:$0 sm:$0xff] }
 0xfea   : > { %3323 = vmatprep.mubr.msk.f32.mxu1 %vm3576_vm1, %v3575_v10 }
0x1000   : > { %v2327_v41 = vpop.f32.mrf.mxu0 }
0x1001   : > { %v2331_v43 = vmul.f32 0.35355338, %v2327_v41 }
0x1002   : > { %v3330_v44 = vpop.f32.mrf.mxu0 }
0x1003   : > { %v2332_v45 = vsel %vm665_vm2, %v2331_v43, -inf  ;;  %v3054_v44 = vld [vmem:[%s4302_s12 + $0xf8] sm:$0xff] }
0x1004   : > { %2333 = vmax.xlane.f32.xlu0 %v2332_v45  ;;  %v3053_v45 = vld [vmem:[%s4302_s12 + $0xf0] sm:$0xff] }
0x108d   : > { %v2334_v46 = vpop.xlane.xlu0 %2333 }
0x108e   : > { %v2335_v47 = vsub.f32 %v2331_v43, %v2334_v46  ;;  %v3052_v46 = vld [vmem:[%s4302_s12 + $0xe8] sm:$0xff] }
0x1090   : > { %v2336_v48 = vmul.f32 1.442695, %v2335_v47  ;;  %v3051_v47 = vld [vmem:[%s4302_s12 + $0xe0] sm:$0xff] }
0x1092   : > { %3497 = vpow2.f32 %v2336_v48  ;;  %v3050_v48 = vld [vmem:[%s4302_s12 + $0xd8] sm:$0xff] }
0x109f   : > { %v3498_v55 = vpop.eup %3497 }
0x10a0   : > { %v2338_v42 = vsel %vm665_vm2, %v3498_v55, 0.0 }
0x10a5   : > { %v2087_v2 = vpop.f32.mrf.mxu1 }
0x10a7   : > { %v3315_v50 = vpop.f32.mrf.mxu1 }
0x10a8   : > { %v3048_v50 = vld [vmem:[%s4302_s12 + $0xc8] sm:$0xff] }
0x10a9   : > { %v2165_v51 = vpop.f32.mrf.mxu1 }
0x10aa   : > { %v2169_v52 = vmul.f32 0.35355338, %v2165_v51  ;;  %v3047_v51 = vld [vmem:[%s4302_s12 + $0xc0] sm:$0xff] }
0x10ab   : > { %v3320_v53 = vpop.f32.mrf.mxu1 }
0x10ac   : > { %v2170_v54 = vsel %vm665_vm2, %v2169_v52, -inf  ;;  %v3045_v53 = vld [vmem:[%s4302_s12 + $0xb0] sm:$0xff] }
0x10ad   : > { %2171 = vmax.xlane.f32.xlu1 %v2170_v54  ;;  %v3044_v54 = vld [vmem:[%s4302_s12 + $0xa8] sm:$0xff] }
0x10b1   : > { %2339 = vadd.xlane.f32.xlu1 %v2338_v42  ;;  %v3042_v42 = vld [vmem:[%s4302_s12 + $0x98] sm:$0xff] }
0x10c2   : > { %2417 = vrot.lane.b32.xlu1 %v2087_v2, %s4338_s21  ;;  %v3049_v2 = vld [vmem:[%s4302_s12 + $0xd0] sm:$0xff]  ;;  %s3517_s21 = sshll.u32 %s3587_s28, 4  ;;  %s3518_s21 = int_to_ptr.vmem [resolvable:$false] %s3517_s21 }
0x10c3   : > { %s3519_s2 = scalar_lea.vmem %s3518_s21, 256 }
0x1136   : > { %v2172_v56 = vpop.xlane.xlu1 %2171 }
0x1137   : > { %v2173_v57 = vsub.f32 %v2169_v52, %v2172_v56  ;;  %v3046_v52 = vld [vmem:[%s4302_s12 + $0xb8] sm:$0xff]  ;;  %v3041_v56 = vld [vmem:[%s4302_s12 + $0x90] sm:$0xff] }
0x1139   : > { %v2174_v58 = vmul.f32 1.442695, %v2173_v57  ;;  %v3040_v57 = vld [vmem:[%s4302_s12 + $0x88] sm:$0xff] }
0x113a   : > { %v2340_v61 = vpop.xlane.xlu1 %2339 }
0x113b   : > { %3499 = vpow2.f32 %v2174_v58  ;;  %v3039_v58 = vld [vmem:[%s4302_s12 + $0x80] sm:$0xff] }
0x113e   : > { %v2418_v14 = vpop.permute.xlu1 %2417 }
0x113f   : > { %v2428_v16 = vsel %vm665_vm2, %v4028_v24, %v2418_v14 }
0x1148   : > { %v3500_v59 = vpop.eup %3499 }
0x1149   : > { %v2176_v60 = vsel %vm665_vm2, %v3500_v59, 0.0 }
0x114a   : > { %2177 = vadd.xlane.f32.xlu0 %v2176_v60 }
0x1160   : > { %2181 = vrot.lane.b32.xlu0 %v4002_v6, %s4339_s19  ;;  %v3023_v6 = vld [vmem:[%s4296_s6 + $0x30] sm:$0xff]  ;;  %s4340_s19 = smov 16  }
0x1161   : > { %3339 = vmatpush3.msra.mxu0 %v3023_v6 }
0x1162   : > { %3340 = vmatprep.subr.mxu0 %v3575_v10 }
0x1163   : > { %3341 = vmatpush3.msra.mxu0 %v3022_v7 }
0x1164   : > { %3342 = vmatprep.subr.mxu0 %v3575_v10 }
0x1165   : > { %3343 = vmatpush3.msra.mxu0 %v3021_v8 }
0x1166   : > { %3358 = vmatprep.subr.mxu0 %v3575_v10 }
0x11d3   : > { %v2178_v62 = vpop.xlane.xlu0 %2177 }
0x11d4   : > { %3501 = vrcp.f32 %v2178_v62 }
0x11d5   : > { %3503 = vrcp.f32 %v2340_v61 }
0x11d7   : > { %v2182_v63 = vpop.permute.xlu0 %2181 }
0x11d8   : > { %3322 = vmatpush3.msra.mxu1 %v2182_v63 }
0x11d9   : > { %3331 = vmatprep.subr.mxu1 %v3575_v10 }
0x11e1   : > { %v3502_v0 = vpop.eup %3501 }
0x11e2   : > { %v2180_v1 = vmul.f32 %v3502_v0, %v3500_v59  ;;  %v3504_v3 = vpop.eup %3503  ;;  %v3037_v59 = vld [vmem:[%s4301_s11 + $0x1] ss:$0 sm:$0xff] }
0x11e3   : > { %v2342_v4 = vmul.f32 %v3504_v3, %v3498_v55  ;;  %v3043_v55 = vld [vmem:[%s4302_s12 + $0xa0] sm:$0xff] }
0x11e4   : > { %3324 = vmatmul.mubr.msk.f32.vlgmr.msra.gmra.mxu1 %vm665_vm2, %v2180_v1 }
0x11e5   : > { %3332 = vmatpush3.msra.mxu1 %v2182_v63  ;;  %3333 = vmatprep.mubr.msk.f32.mxu1 %vm3576_vm1, %v3575_v10 }
0x11e6   : > { %3347 = vmatprep.subr.mxu1 %v3575_v10 }
0x11e8   : > { %3334 = vmatmul.mubr.msk.f32.vlgmr.msra.gmra.mxu1 %vm665_vm2, %v2342_v4 }
0x11e9   : > { %3355 = vmatprep.mubr.msk.f32.mxu1 %vm3576_vm1, %v3575_v10  ;;  %3348 = vmatpush3.msra.mxu1 %v3035_v31 }
0x11ea   : > { %3349 = vmatprep.subr.mxu1 %v3575_v10 }
0x12a4   : > { %v2253_v9 = vpop.f32.mrf.mxu1 }
0x12a5   : > { %2421 = vrot.lane.b32.xlu1 %v2253_v9, %s4340_s19  ;;  %s537_s19 = sand.u32 1, %s3565_s25  }
0x12a6   : > { %v3325_v11 = vpop.f32.mrf.mxu1  ;;  %s2897_s18 = scalar_lea.sflag [#allocation3], %s537_s19 }
0x12a8   : > { %v2412_v12 = vpop.f32.mrf.mxu1 }
0x12a9   : > { %2425 = vrot.lane.b32.xlu0 %v2412_v12, %s4341_s30  ;;  %s2973_s30 = sshll.u32 %s537_s19, 3 }
0x12aa   : > { %v3335_v13 = vpop.f32.mrf.mxu1  ;;  %s539_s26 = scalar_lea.vmem [#allocation2], %s2973_s30 }
0x12ab   : > { %s2910_s29 = sshll.u32 %s539_s26, 4  ;;  %s4251_s29 = int_to_ptr.vmem [resolvable:$true] %s2910_s29 }
0x12ac   : > { %s3513_s22 = scalar_lea.vmem %s4251_s29, 128  ;;  %p3520_p0 = scmp.lt.s32.totalorder %s4251_s29, %s3518_s21 }
0x12ad   : > { %p3514_p11 = scmp.ne.s32.totalorder %s4251_s29, %s3513_s22  ;;  %p3521_p1 = scmp.lt.s32.totalorder %s3519_s2, %s3513_s22 }
0x12af   : > { %p3515_p12 = pnand %p3514_p11, %p3716_p5  ;;  %p3522_p2 = por %p3521_p1, %p3520_p0 }
0x12b1   : > { %p3516_p13 = pneg %p3515_p12 }
0x12b3   : > { %p3523_p3 = pnand %p3522_p2, %p3516_p13 }
0x1317   : > { %v2422_v15 = vpop.permute.xlu1 %2421 }
0x1318   : > { %v2429_v17 = vsel %vm1325_vm3, %v2428_v16, %v2422_v15 }
0x131b   : > { %v2426_v18 = vpop.permute.xlu0 %2425 }
0x131c   : > { %v2430_v19 = vsel %vm1327_vm4, %v2429_v17, %v2426_v18 }
0x131d   : > { %3345 = vmatmul.mubr.msk.f32.vlgmr.msra.gmra.mxu0 %vm549_vm0, %v2430_v19 }
0x131e   : > { %3390 = vmatprep.mubr.msk.f32.mxu0 %vm3576_vm1, %v3575_v10  ;;  %3359 = vmatpush3.msra.mxu0 %v3054_v44  ;;  %v2789_v44 = vld [vmem:[%s4306_s16] sm:$0xff] }
0x131f   : > { %3360 = vmatprep.subr.mxu0 %v3575_v10 }
0x1320   : > { %3361 = vmatpush3.msra.mxu0 %v3053_v45 }
0x1321   : > { %3362 = vmatprep.subr.mxu0 %v3575_v10 }
0x1322   : > { %3363 = vmatpush3.msra.mxu0 %v3052_v46 }
0x1323   : > { %3364 = vmatprep.subr.mxu0 %v3575_v10 }
0x1324   : > { %3365 = vmatpush3.msra.mxu0 %v3051_v47 }
0x1325   : > { %3366 = vmatprep.subr.mxu0 %v3575_v10 }
0x1326   : > { %3367 = vmatpush3.msra.mxu0 %v3050_v48 }
0x1327   : > { %3368 = vmatprep.subr.mxu0 %v3575_v10 }
0x1328   : > { %3369 = vmatpush3.msra.mxu0 %v3049_v2  ;;  %v3057_v2 = vld [vmem:[%s4304_s14] ss:$0 sm:$0xff] }
0x1329   : > { %3370 = vmatprep.subr.mxu0 %v3575_v10 }
0x132a   : > { %3371 = vmatpush3.msra.mxu0 %v3048_v50 }
0x132b   : > { %3372 = vmatprep.subr.mxu0 %v3575_v10 }
0x132c   : > { %3373 = vmatpush3.msra.mxu0 %v3047_v51 }
0x132d   : > { %3374 = vmatprep.subr.mxu0 %v3575_v10 }
0x132e   : > { %3375 = vmatpush3.msra.mxu0 %v3046_v52 }
0x132f   : > { %3376 = vmatprep.subr.mxu0 %v3575_v10 }
0x1330   : > { %3377 = vmatpush3.msra.mxu0 %v3045_v53 }
0x1331   : > { %3378 = vmatprep.subr.mxu0 %v3575_v10 }
0x1332   : > { %3379 = vmatpush3.msra.mxu0 %v3044_v54 }
0x1333   : > { %3380 = vmatprep.subr.mxu0 %v3575_v10 }
0x1334   : > { %3381 = vmatpush3.msra.mxu0 %v3043_v55 }
0x1335   : > { %3382 = vmatprep.subr.mxu0 %v3575_v10 }
0x1336   : > { %3383 = vmatpush3.msra.mxu0 %v3042_v42 }
0x1337   : > { %3384 = vmatprep.subr.mxu0 %v3575_v10 }
0x1338   : > { %3385 = vmatpush3.msra.mxu0 %v3041_v56 }
0x1339   : > { %3386 = vmatprep.subr.mxu0 %v3575_v10 }
0x133a   : > { %3387 = vmatpush3.msra.mxu0 %v3040_v57 }
0x133b   : > { %3388 = vmatprep.subr.mxu0 %v3575_v10 }
0x133c   : > { %3389 = vmatpush3.msra.mxu0 %v3039_v58 }
0x13dd   : > { %v2505_v20 = vpop.f32.mrf.mxu0 }
0x13de   : > { %v2509_v22 = vadd.f32 %v2505_v20, %v3968_v49  ;;  %v3034_v49 = vld [vmem:[%s4300_s10 + $0x30] sm:$0xff] }
0x13df   : > { %v3346_v23 = vpop.f32.mrf.mxu0  ;;  %3350 = vmatpush3.msra.mxu1 %v3034_v49 }
0x13e0   : > { %v4095_v25 = vadd.f32 %v3027_v21, %v2509_v22  ;;  %3351 = vmatprep.subr.mxu1 %v3575_v10 }
0x13e1   : > { %3352 = vmatpush3.msra.mxu1 %v3033_v32  ;;  %v2796_v32 = vld [vmem:[%s4306_s16 + $0x38] sm:$0xff] }
0x13e2   : > { %v2523_v24 = vsel %vm549_vm0, %v4095_v25, 0.0  ;;  %3353 = vmatprep.subr.mxu1 %v3575_v10 }
0x13e3   : > { %2524 = vadd.xlane.f32.xlu1 %v2523_v24  ;;  %3354 = vmatpush3.msra.mxu1 %v3032_v33  ;;  %v2795_v33 = vld [vmem:[%s4306_s16 + $0x30] sm:$0xff] }
0x13e4   : > { %3393 = vmatprep.subr.mxu1 %v3575_v10 }
0x146c   : > { %v2525_v26 = vpop.xlane.xlu1 %2524 }
0x146d   : > { %v2526_v27 = vmul.f32 0.03125, %v2525_v26 }
0x146f   : > { %v2527_v28 = vsub.f32 %v4095_v25, %v2526_v27 }
0x1471   : > { %v2528_v29 = vmul.f32 %v2527_v28, %v2527_v28 }
0x1473   : > { %v2529_v30 = vsel %vm549_vm0, %v2528_v29, 0.0 }
0x1474   : > { %2530 = vadd.xlane.f32.xlu0 %v2529_v30 }
0x14fd   : > { %v2531_v34 = vpop.xlane.xlu0 %2530 }
0x14fe   : > { %v2532_v35 = vmul.f32 0.03125, %v2531_v34 }
0x1500   : > { %v2533_v36 = vadd.f32 1e-05, %v2532_v35 }
0x1502   : > { %3505 = vrsqrt.f32 %v2533_v36 }
0x150f   : > { %v3506_v37 = vpop.eup %3505 }
0x1510   : > { %v2535_v39 = vmul.f32 %v3506_v37, %v2527_v28  ;;  %v3056_v28 = vld [vmem:[%s4303_s13 + $0x1] ss:$0 sm:$0xff] }
0x1512   : > { %v2542_v41 = vmul.f32 %v3030_v38, %v2535_v39  ;;  %v2794_v38 = vld [vmem:[%s4306_s16 + $0x28] sm:$0xff]  ;;  %v2793_v39 = vld [vmem:[%s4306_s16 + $0x20] sm:$0xff] }
0x1514   : > { %v2549_v43 = vadd.f32 %v3031_v40, %v2542_v41  ;;  %v2792_v40 = vld [vmem:[%s4306_s16 + $0x18] sm:$0xff]  ;;  %v2791_v41 = vld [vmem:[%s4306_s16 + $0x10] sm:$0xff] }
0x1516   : > { %3356 = vmatmul.mubr.msk.f32.vlgmr.msra.gmra.mxu1 %vm549_vm0, %v2549_v43  ;;  %v2790_v43 = vld [vmem:[%s4306_s16 + $0x8] sm:$0xff] }
0x1517   : > { %3409 = vmatprep.mubr.msk.f32.mxu1 %vm3576_vm1, %v3575_v10  ;;  %3394 = vmatpush3.xpose.msk.msra.mxu1 %vm549_vm0, %v2796_v32 }
0x1518   : > { %3395 = vmatprep.subr.mxu1 %v3575_v10 }
0x151b   : > { %3396 = vmatpush3.xpose.msk.msra.mxu1 %vm549_vm0, %v2795_v33 }
0x151c   : > { %3397 = vmatprep.subr.mxu1 %v3575_v10 }
0x151f   : > { %3398 = vmatpush3.xpose.msk.msra.mxu1 %vm549_vm0, %v2794_v38 }
0x1520   : > { %3399 = vmatprep.subr.mxu1 %v3575_v10 }
0x1523   : > { %3400 = vmatpush3.xpose.msk.msra.mxu1 %vm549_vm0, %v2793_v39 }
0x1524   : > { %3401 = vmatprep.subr.mxu1 %v3575_v10 }
0x1527   : > { %3402 = vmatpush3.xpose.msk.msra.mxu1 %vm549_vm0, %v2792_v40 }
0x1528   : > { %3403 = vmatprep.subr.mxu1 %v3575_v10 }
0x152b   : > { %3404 = vmatpush3.xpose.msk.msra.mxu1 %vm549_vm0, %v2791_v41 }
0x152c   : > { %3405 = vmatprep.subr.mxu1 %v3575_v10 }
0x152f   : > { %3406 = vmatpush3.xpose.msk.msra.mxu1 %vm549_vm0, %v2790_v43 }
0x1530   : > { %3407 = vmatprep.subr.mxu1 %v3575_v10  ;;  %v3058_v10 = vld [vmem:[%s4305_s15] ss:$0 sm:$0xff] }
0x1533   : > { %3408 = vmatpush3.xpose.msk.msra.mxu1 %vm549_vm0, %v2789_v44 }
0x15d6   : > { %v2632_v60 = vpop.f32.mrf.mxu1 }
0x15d7   : > { %v2633_v61 = vadd.f32 %v3037_v59, %v2632_v60 }
0x15d8   : > { %v3357_v62 = vpop.f32.mrf.mxu1 }
0x15d9   : > { %v2637_v63 = vmul.f32 0.70710677, %v2633_v61  ;;  %v2636_v23 = vmul.f32 0.5, %v2633_v61 }
0x15db   : > { %v2638_v0 = vand.u32 2147483647, %v2637_v63  ;;  %vm2658_vm6 = vcmp.ge.f32.partialorder %v2637_v63, 0.0 }
0x15dd   : > { %v2639_v1 = vmul.f32 0.3275911, %v2638_v0  ;;  %v2652_v4 = vmul.f32 %v2638_v0, %v2638_v0 }
0x15df   : > { %v2640_v3 = vadd.f32 1.0, %v2639_v1  ;;  %v2653_v5 = vsub.f32 0.0, %v2652_v4 }
0x15e1   : > { %3507 = vrcp.f32 %v2640_v3  ;;  %v2654_v8 = vmul.f32 1.442695, %v2653_v5 }
0x15e3   : > { %3509 = vpow2.f32 %v2654_v8 }
0x15ee   : > { %v3508_v6 = vpop.eup %3507 }
0x15ef   : > { %v2643_v7 = vmul.f32 1.0614054, %v3508_v6 }
0x15f0   : > { %v3510_v18 = vpop.eup %3509 }
0x15f1   : > { %v2644_v9 = vadd.f32 -1.4531521, %v2643_v7 }
0x15f3   : > { %v2645_v11 = vmul.f32 %v3508_v6, %v2644_v9 }
0x15f5   : > { %v2646_v12 = vadd.f32 1.4214138, %v2645_v11 }
0x15f7   : > { %v2647_v13 = vmul.f32 %v3508_v6, %v2646_v12 }
0x15f9   : > { %v2648_v14 = vadd.f32 -0.28449672, %v2647_v13 }
0x15fb   : > { %v2649_v15 = vmul.f32 %v3508_v6, %v2648_v14 }
0x15fd   : > { %v2650_v16 = vadd.f32 0.2548296, %v2649_v15 }
0x15ff   : > { %v2651_v17 = vmul.f32 %v3508_v6, %v2650_v16 }
0x1601   : > { %v2656_v19 = vmul.f32 %v3510_v18, %v2651_v17 }
0x1603   : > { %v2657_v20 = vsub.f32 1.0, %v2656_v19 }
0x1605   : > { %v2659_v21 = vsub.f32 0.0, %v2657_v20 }
0x1607   : > { %v2660_v22 = vsel %vm2658_vm6, %v2657_v20, %v2659_v21 }
0x1608   : > { %v2661_v24 = vadd.f32 1.0, %v2660_v22 }
0x160a   : > { %v2662_v26 = vmul.f32 %v2661_v24, %v2636_v23 }
0x160c   : > { %3391 = vmatmul.mubr.f32.vlgmr.msra.gmra.mxu0 %v2662_v26 }
0x16cc   : > { %v2746_v27 = vpop.f32.mrf.mxu0 }
0x16cd   : > { %v2750_v29 = vadd.f32 %v2746_v27, %v4095_v25 }
0x16ce   : > { %v3392_v30 = vpop.f32.mrf.mxu0 }
0x16cf   : > { %v2759_v31 = vadd.f32 %v3056_v28, %v2750_v29 }
0x16d1   : > { %v2762_v49 = vsel %vm549_vm0, %v2759_v31, 0.0 }
0x16d2   : > { %2763 = vadd.xlane.f32.xlu0 %v2762_v49 }
0x175b   : > { %v2764_v25 = vpop.xlane.xlu0 %2763 }
0x175c   : > { %v2765_v34 = vmul.f32 0.03125, %v2764_v25 }
0x175e   : > { %v2766_v35 = vsub.f32 %v2759_v31, %v2765_v34 }
0x1760   : > { %v2767_v36 = vmul.f32 %v2766_v35, %v2766_v35 }
0x1762   : > { %v2768_v37 = vsel %vm549_vm0, %v2767_v36, 0.0 }
0x1763   : > { %2769 = vadd.xlane.f32.xlu1 %v2768_v37 }
0x17ec   : > { %v2770_v45 = vpop.xlane.xlu1 %2769 }
0x17ed   : > { %v2771_v46 = vmul.f32 0.03125, %v2770_v45 }
0x17ef   : > { %v2772_v47 = vadd.f32 1e-05, %v2771_v46 }
0x17f1   : > { %3511 = vrsqrt.f32 %v2772_v47 }
0x17fe   : > { %v3512_v48 = vpop.eup %3511 }
0x17ff   : > { %v2774_v50 = vmul.f32 %v3512_v48, %v2766_v35 }
0x1801   : > { %v2781_v51 = vmul.f32 %v3057_v2, %v2774_v50 }
0x1803   : > { %v2788_v52 = vadd.f32 %v3058_v10, %v2781_v51 }
0x1805   : > { %3410 = vmatmul.mubr.msk.f32.vlgmr.msra.gmra.mxu1 %vm549_vm0, %v2788_v52 }
0x18c5   : > { %v2890_v53 = vpop.f32.mrf.mxu1 }
0x18c6   : > { %2895 = vst.msk [vmem:[%s539_s26] sm:$0xff] %vm2894_vm7, %v2890_v53 }
0x18c7   : > { %v3411_v54 = vpop.f32.mrf.mxu1 }
0x18c8   : > { %3526 = shalt.err (!%p3523_p3)
}
0x18c9   : > { %s3527_s3 = scalar_lea.hbm %s4249_s0, 128  ;;  %s3531_s23 = scalar_lea.hbm %s4307_s17, 256 }
0x18ca   : > { %p3528_p4 = scmp.ne.s32.totalorder %s4249_s0, %s3527_s3  ;;  %p3532_p9 = scmp.lt.s32.totalorder %s4249_s0, %s4307_s17 }
0x18cb   : > { %p3533_p10 = scmp.lt.s32.totalorder %s3531_s23, %s3527_s3 }
0x18cc   : > { %p3529_p7 = pnand %p3528_p4, %p3716_p5 }
0x18cd   : > { %p3534_p11 = por %p3533_p10, %p3532_p9 }
0x18ce   : > { %p3530_p8 = pneg %p3529_p7 }
0x18d0   : > { %p3535_p12 = pnand %p3534_p11, %p3530_p8 }
0x18d2   : > { %3538 = shalt.err (!%p3535_p12)
}
0x18d3   : > { %3412 = dma.vmem_to_hbm [thread:$0]  (%p3716_p5), %s4251_s29, 128, %s4249_s0, %s2897_s18  }
0x18d4 PF: > { %p3418_p13 = scmp.ge.s32.totalorder %s3573_s27, 2  ;;  %s2922_s22 = sand.u32 1, %s3561_s24  }
0x18d5   : > { %s2923_s21 = scalar_lea.sflag [#allocation3], %s2922_s22 }
0x18d6   : > { %p3415_p0 = pnand %p3418_p13, %p3720_p6 }
0x18d8   : > { %p3416_p1 = pneg %p3415_p0 }
0x18da   : > { %3556 = dma.done.wait (%p3416_p1), %s2923_s21, 128  }
0x18db   : > { %3558 = vsyncadd (%p3416_p1), %s2923_s21, 4294967168  ;;  %s4342_s27 = sld [smem:[#allocation6_spill]]  ;;  %s4345_s24 = smov %s3565_s25 }
0x18dc   : > { %s4343_s2 = sld [smem:[#allocation5_spill]] }
0x18dd   : > { %s4344_s26 = sld [smem:[#allocation7_spill]] }
0x18e1   : > { %p27_p2 = scmp.ge.s32.totalorder %s4342_s27, 4  }
0x18e2   : > { %s4346_s25 = smov %s4343_s2 }
0x18e3   :  { %29 = sbr.rel (!%p27_p2) target bundleno = 8 (0x8), region = 135 }
0x18e8   :  { %2928 = vsyncpa [#allocation3], 1 }
0x18e9   :  { %2930 = vsyncpa [#allocation3 + $0x1], 1 }

</bundles_post_ra>
